<compile_context>
chip_gen: v7x
topology: tpu7x:2x2x1
jax: 0.10.0
libtpu: 0.0.40
codegen_flags: <defaults>
</compile_context>

<pallas_src>
from functools import partial

import numpy as np
import jax
import jax.numpy as jnp
from jax.experimental import pallas as pl
from jax.experimental.pallas import tpu as pltpu

NUM_POINTS = 9                      # must be 2n + 1
NUM_DIMS = 4
NUM_SPLINES = NUM_POINTS - 2        # = 7
NUM_SEGMENTS = NUM_SPLINES - 1      # = 6
HIDDEN = [1, 16, 64, 256, 64, 16, NUM_DIMS]
LANES = 128
COEF_ROWS = NUM_SEGMENTS * 6 * NUM_DIMS   # 144 (multiple of 8)


def _round_up(x, m):
    return ((x + m - 1) // m) * m


# ---------------------------------------------------------------------------
# Pallas kernel: lane-dense spline evaluation over a (tile_r, 128) slab of t.
# ---------------------------------------------------------------------------
def yuksel_kernel(coef_ref, t_ref, out_ref):
    s = t_ref[...] * float(NUM_SEGMENTS)           # (tile_r, 128) f32
    s2 = s * s
    c = jnp.cos((jnp.pi * 0.5) * s)                # single EUP op per element
    w = c * c                                      # cos^2(pi*s/2)

    probs = [jnp.zeros_like(s) for _ in range(NUM_DIMS)]

    for i in range(NUM_SEGMENTS):                  # static unroll (6)
        choice = jnp.logical_and(s >= float(i), s <= float(i + 1))
        base_off = i * 6 * NUM_DIMS
        for k in range(NUM_DIMS):                  # static unroll (4)
            # each coef row is one scalar replicated across the 128 lanes
            a_b = coef_ref[base_off + 0 * NUM_DIMS + k]    # (128,)
            b_b = coef_ref[base_off + 1 * NUM_DIMS + k]
            c_b = coef_ref[base_off + 2 * NUM_DIMS + k]
            a_m = coef_ref[base_off + 3 * NUM_DIMS + k]
            b_m = coef_ref[base_off + 4 * NUM_DIMS + k]
            c_m = coef_ref[base_off + 5 * NUM_DIMS + k]
            base = a_b + b_b * s + c_b * s2
            mult = a_m + b_m * s + c_m * s2
            blend = base + w * mult
            probs[k] = jnp.where(choice, blend, probs[k])

    for k in range(NUM_DIMS):
        out_ref[k] = probs[k]                      # (tile_r, 128) dense stores


# ---------------------------------------------------------------------------
# Host-side (plain XLA) pieces: the O(1)-in-T MLP and coefficient table.
# ---------------------------------------------------------------------------
def _layer_pass(params):
    w1, b1, w2, b2, w3, b3, w4, b4, w5, b5, w6, b6 = params
    pos = jnp.arange(1, NUM_POINTS + 1, dtype=jnp.float32).reshape(NUM_POINTS, 1)
    h = jax.nn.sigmoid(pos @ w1 + b1)
    h = jax.nn.sigmoid(h @ w2 + b2)
    h = jax.nn.relu(h @ w3 + b3)
    h = jax.nn.relu(h @ w4 + b4)
    h = jax.nn.relu(h @ w5 + b5)
    h = h @ w6 + b6
    return jnp.cumsum(h, axis=1)                   # (NUM_POINTS, NUM_DIMS)


def _segment_coefs(P):
    """Per-segment quadratic coefficients (in s = t*NUM_SEGMENTS) so that the
    blended value is  base(s) + cos^2(pi*s/2) * mult(s)."""

    def poly_u(p0, p1, p2):
        # spline in u:  c0 + c1*u + c2*u^2
        return p0, 2.0 * (p1 - p0), p0 - 2.0 * p1 + p2

    def to_s(c0, c1, c2, shift):
        # substitute u = 0.5*(s + shift)
        A = c0 + 0.5 * shift * c1 + 0.25 * shift * shift * c2
        B = 0.5 * c1 + 0.5 * shift * c2
        C = 0.25 * c2
        return A, B, C

    p0, p1, p2 = P[0], P[1], P[2]                  # each (NUM_DIMS,)
    rows = []
    for i in range(NUM_SEGMENTS):
        q0, q1, q2 = p0, p1, p2                    # P_temp for this segment
        p0 = (q0 + q2) * 0.25 + q1 * 0.5           # P_new[0]
        p2 = P[i + 3]                              # P_new[2]
        p1 = 2.0 * (q2 - (p0 + p2) * 0.25)         # P_new[1]
        # prev spline evaluated at u = d + 0.5 = 0.5*(s + (1 - i))
        Ap, Bp, Cp = to_s(*poly_u(q0, q1, q2), shift=float(1 - i))
        # curr spline evaluated at u = d = 0.5*(s - i)
        Ac, Bc, Cc = to_s(*poly_u(p0, p1, p2), shift=float(-i))
        # blend_i = cos^2(pi*d_i)*f_prev + sin^2(pi*d_i)*f_curr, and
        # cos^2(pi*d_i) == cos^2(pi*s/2) for even i, 1 - cos^2(pi*s/2) for odd i.
        if i % 2 == 0:
            base = (Ac, Bc, Cc)
            mult = (Ap - Ac, Bp - Bc, Cp - Cc)
        else:
            base = (Ap, Bp, Cp)
            mult = (Ac - Ap, Bc - Bp, Cc - Cp)
        rows.append(jnp.stack([*base, *mult], axis=0))   # (6, NUM_DIMS)
    coef = jnp.stack(rows, axis=0)                 # (NUM_SEGMENTS, 6, NUM_DIMS)
    return coef.reshape(-1)                        # (COEF_ROWS,)


@partial(jax.jit, static_argnames=("tile_rows",))
def yuksel_spline(t, params, tile_rows=512):
    T = t.shape[0]
    R = -(-T // LANES)                             # rows of 128 lanes
    tile_r = min(_round_up(tile_rows, 8), _round_up(R, 8))
    R_pad = _round_up(R, tile_r)
    T_pad = R_pad * LANES

    P = _layer_pass(params)
    coef = _segment_coefs(P)                                        # (144,)
    coef_slab = jnp.broadcast_to(coef[:, None], (COEF_ROWS, LANES)) # (144,128)

    t_flat = jnp.pad(t.astype(jnp.float32), (0, T_pad - T))
    t_slab = t_flat.reshape(R_pad, LANES)

    out = pl.pallas_call(
        yuksel_kernel,
        out_shape=jax.ShapeDtypeStruct((NUM_DIMS, R_pad, LANES), jnp.float32),
        grid_spec=pltpu.PrefetchScalarGridSpec(
            num_scalar_prefetch=0,
            grid=(R_pad // tile_r,),
            in_specs=[
                pl.BlockSpec((COEF_ROWS, LANES), lambda i: (0, 0)),     # constant
                pl.BlockSpec((tile_r, LANES), lambda i: (i, 0)),        # t tile
            ],
            out_specs=pl.BlockSpec((NUM_DIMS, tile_r, LANES), lambda i: (0, i, 0)),
        ),
        compiler_params=pltpu.CompilerParams(
            dimension_semantics=("parallel",),      # megacore where available
        ),
    )(coef_slab, t_slab)

    # (NUM_DIMS, R_pad, 128) -> (T, NUM_DIMS)
    probs = out.transpose(1, 2, 0).reshape(T_pad, NUM_DIMS)
    return probs[:T]


# ---------------------------------------------------------------------------
# Parameters + pure-JAX reference mirroring the PyTorch forward.
# ---------------------------------------------------------------------------
def make_params(key):
    """Deterministic PyTorch-Linear-like init; weights stored (in, out)."""
    params = []
    for fan_in, fan_out in zip(HIDDEN[:-1], HIDDEN[1:]):
        key, kw, kb = jax.random.split(key, 3)
        bound = 1.0 / np.sqrt(fan_in)
        w = jax.random.uniform(kw, (fan_in, fan_out), jnp.float32, -bound, bound)
        b = jax.random.uniform(kb, (1, fan_out), jnp.float32, -bound, bound)
        params += [w, b]
    return params


def _spline_eval(p0, p1, p2, u):
    c0 = p0
    c1 = -2.0 * p0 + 2.0 * p1
    c2 = p0 - 2.0 * p1 + p2
    return c0 + u * c1 + (u * u) * c2


def yuksel_ref(t, params):
    P = _layer_pass(params)
    t2 = t.reshape(-1, 1).astype(jnp.float32)
    probs = jnp.zeros((t.shape[0], NUM_DIMS), jnp.float32)
    p0, p1, p2 = P[0:1], P[1:2], P[2:3]
    for i in range(NUM_SEGMENTS):
        d = (t2 * (NUM_SPLINES - 1) - i) * 0.5
        choice = ((d >= 0) & (d <= 0.5)).astype(jnp.float32)
        q0, q1, q2 = p0, p1, p2
        p0 = (q0 + q2) / 4 + q1 / 2
        p2 = P[i + 3:i + 4]
        p1 = 2 * (q2 - (p0 + p2) / 4)
        f_prev = _spline_eval(q0, q1, q2, d + 0.5)
        f_curr = _spline_eval(p0, p1, p2, d)
        probs = (1 - choice) * probs + choice * (
            jnp.cos(jnp.pi * d) ** 2 * f_prev + jnp.sin(jnp.pi * d) ** 2 * f_curr
        )
    return probs


if __name__ == "__main__":
    key = jax.random.PRNGKey(0)
    k_t, k_p = jax.random.split(key)
    params = make_params(k_p)

    # Small test: T = 8 time samples in [0, 1]  (single grid step).
    T = 8
    t_small = jax.random.uniform(k_t, (T,), jnp.float32, 0.0, 1.0)
    out_small = jax.block_until_ready(yuksel_spline(t_small, params))
    ref_small = yuksel_ref(t_small, params)
    np.testing.assert_allclose(np.asarray(out_small), np.asarray(ref_small),
                               rtol=1e-3, atol=1e-3)
    assert out_small.shape == (T, NUM_DIMS)

    # Multi-tile test (exercises grid pipelining + padding), still small.
    T2 = 2053
    t_big = jax.random.uniform(jax.random.PRNGKey(1), (T2,), jnp.float32, 0.0, 1.0)
    out_big = jax.block_until_ready(yuksel_spline(t_big, params, tile_rows=8))
    ref_big = yuksel_ref(t_big, params)
    np.testing.assert_allclose(np.asarray(out_big), np.asarray(ref_big),
                               rtol=1e-3, atol=1e-3)
    assert out_big.shape == (T2, NUM_DIMS)

    print("KERNEL_OK")
</pallas_src>

<mosaic_0001>
module attributes {stable_mosaic.version = 11 : i64} {
  func.func @yuksel_kernel(%arg0: i32, %arg1: memref<144x128xf32, #tpu.memory_space<vmem>>, %arg2: memref<8x128xf32, #tpu.memory_space<vmem>>, %arg3: memref<4x8x128xf32, #tpu.memory_space<vmem>>) attributes {dimension_semantics = [#tpu.dimension_semantics<parallel>], iteration_bounds = array<i64: 1>, scalar_prefetch = 0 : i64, scratch_operands = 0 : i64, tpu.core_type = #tpu.core_type<tc>, window_params = [{pipeline_mode = #tpu.pipeline_mode<synchronous>, transform_indices = @transform_0, window_bounds = array<i64: 144, 128>}, {transform_indices = @transform_1, window_bounds = array<i64: 8, 128>}, {transform_indices = @transform_2, window_bounds = array<i64: 4, 8, 128>}]} {
    %c0 = arith.constant 0 : index
    %c0_0 = arith.constant 0 : index
    %0 = vector.load %arg2[%c0, %c0_0] : memref<8x128xf32, #tpu.memory_space<vmem>>, vector<8x128xf32>
    %cst = arith.constant 6.000000e+00 : f32
    %1 = vector.broadcast %cst : f32 to vector<8x128xf32>
    %2 = arith.mulf %0, %1 : vector<8x128xf32>
    %3 = arith.mulf %2, %2 : vector<8x128xf32>
    %cst_1 = arith.constant 1.57079637 : f32
    %4 = vector.broadcast %cst_1 : f32 to vector<8x128xf32>
    %5 = arith.mulf %4, %2 : vector<8x128xf32>
    %6 = math.cos %5 : vector<8x128xf32>
    %7 = arith.mulf %6, %6 : vector<8x128xf32>
    %cst_2 = arith.constant 0.000000e+00 : f32
    %8 = vector.broadcast %cst_2 : f32 to vector<8x128xf32>
    %cst_3 = arith.constant 0.000000e+00 : f32
    %9 = vector.broadcast %cst_3 : f32 to vector<8x128xf32>
    %cst_4 = arith.constant 0.000000e+00 : f32
    %10 = vector.broadcast %cst_4 : f32 to vector<8x128xf32>
    %cst_5 = arith.constant 0.000000e+00 : f32
    %11 = vector.broadcast %cst_5 : f32 to vector<8x128xf32>
    %cst_6 = arith.constant 0.000000e+00 : f32
    %12 = vector.broadcast %cst_6 : f32 to vector<8x128xf32>
    %13 = arith.cmpf oge, %2, %12 : vector<8x128xf32>
    %cst_7 = arith.constant 1.000000e+00 : f32
    %14 = vector.broadcast %cst_7 : f32 to vector<8x128xf32>
    %15 = arith.cmpf ole, %2, %14 : vector<8x128xf32>
    %16 = arith.andi %13, %15 : vector<8x128xi1>
    %c0_8 = arith.constant 0 : index
    %c0_9 = arith.constant 0 : index
    %17 = vector.load %arg1[%c0_8, %c0_9] : memref<144x128xf32, #tpu.memory_space<vmem>>, vector<1x128xf32>
    %18 = vector.shape_cast %17 : vector<1x128xf32> to vector<128xf32>
    %c4 = arith.constant 4 : index
    %c0_10 = arith.constant 0 : index
    %19 = vector.load %arg1[%c4, %c0_10] : memref<144x128xf32, #tpu.memory_space<vmem>>, vector<1x128xf32>
    %20 = vector.shape_cast %19 : vector<1x128xf32> to vector<128xf32>
    %c8 = arith.constant 8 : index
    %c0_11 = arith.constant 0 : index
    %21 = vector.load %arg1[%c8, %c0_11] : memref<144x128xf32, #tpu.memory_space<vmem>>, vector<1x128xf32>
    %22 = vector.shape_cast %21 : vector<1x128xf32> to vector<128xf32>
    %c12 = arith.constant 12 : index
    %c0_12 = arith.constant 0 : index
    %23 = vector.load %arg1[%c12, %c0_12] : memref<144x128xf32, #tpu.memory_space<vmem>>, vector<1x128xf32>
    %24 = vector.shape_cast %23 : vector<1x128xf32> to vector<128xf32>
    %c16 = arith.constant 16 : index
    %c0_13 = arith.constant 0 : index
    %25 = vector.load %arg1[%c16, %c0_13] : memref<144x128xf32, #tpu.memory_space<vmem>>, vector<1x128xf32>
    %26 = vector.shape_cast %25 : vector<1x128xf32> to vector<128xf32>
    %c20 = arith.constant 20 : index
    %c0_14 = arith.constant 0 : index
    %27 = vector.load %arg1[%c20, %c0_14] : memref<144x128xf32, #tpu.memory_space<vmem>>, vector<1x128xf32>
    %28 = vector.shape_cast %27 : vector<1x128xf32> to vector<128xf32>
    %29 = vector.shape_cast %20 : vector<128xf32> to vector<1x128xf32>
    %30 = vector.broadcast %29 : vector<1x128xf32> to vector<8x128xf32>
    %31 = arith.mulf %30, %2 : vector<8x128xf32>
    %32 = vector.shape_cast %18 : vector<128xf32> to vector<1x128xf32>
    %33 = vector.broadcast %32 : vector<1x128xf32> to vector<8x128xf32>
    %34 = arith.addf %33, %31 : vector<8x128xf32>
    %35 = vector.shape_cast %22 : vector<128xf32> to vector<1x128xf32>
    %36 = vector.broadcast %35 : vector<1x128xf32> to vector<8x128xf32>
    %37 = arith.mulf %36, %3 : vector<8x128xf32>
    %38 = arith.addf %34, %37 : vector<8x128xf32>
    %39 = vector.shape_cast %26 : vector<128xf32> to vector<1x128xf32>
    %40 = vector.broadcast %39 : vector<1x128xf32> to vector<8x128xf32>
    %41 = arith.mulf %40, %2 : vector<8x128xf32>
    %42 = vector.shape_cast %24 : vector<128xf32> to vector<1x128xf32>
    %43 = vector.broadcast %42 : vector<1x128xf32> to vector<8x128xf32>
    %44 = arith.addf %43, %41 : vector<8x128xf32>
    %45 = vector.shape_cast %28 : vector<128xf32> to vector<1x128xf32>
    %46 = vector.broadcast %45 : vector<1x128xf32> to vector<8x128xf32>
    %47 = arith.mulf %46, %3 : vector<8x128xf32>
    %48 = arith.addf %44, %47 : vector<8x128xf32>
    %49 = arith.mulf %7, %48 : vector<8x128xf32>
    %50 = arith.addf %38, %49 : vector<8x128xf32>
    %51 = arith.select %16, %50, %8 : vector<8x128xi1>, vector<8x128xf32>
    %c1 = arith.constant 1 : index
    %c0_15 = arith.constant 0 : index
    %52 = vector.load %arg1[%c1, %c0_15] : memref<144x128xf32, #tpu.memory_space<vmem>>, vector<1x128xf32>
    %53 = vector.shape_cast %52 : vector<1x128xf32> to vector<128xf32>
    %c5 = arith.constant 5 : index
    %c0_16 = arith.constant 0 : index
    %54 = vector.load %arg1[%c5, %c0_16] : memref<144x128xf32, #tpu.memory_space<vmem>>, vector<1x128xf32>
    %55 = vector.shape_cast %54 : vector<1x128xf32> to vector<128xf32>
    %c9 = arith.constant 9 : index
    %c0_17 = arith.constant 0 : index
    %56 = vector.load %arg1[%c9, %c0_17] : memref<144x128xf32, #tpu.memory_space<vmem>>, vector<1x128xf32>
    %57 = vector.shape_cast %56 : vector<1x128xf32> to vector<128xf32>
    %c13 = arith.constant 13 : index
    %c0_18 = arith.constant 0 : index
    %58 = vector.load %arg1[%c13, %c0_18] : memref<144x128xf32, #tpu.memory_space<vmem>>, vector<1x128xf32>
    %59 = vector.shape_cast %58 : vector<1x128xf32> to vector<128xf32>
    %c17 = arith.constant 17 : index
    %c0_19 = arith.constant 0 : index
    %60 = vector.load %arg1[%c17, %c0_19] : memref<144x128xf32, #tpu.memory_space<vmem>>, vector<1x128xf32>
    %61 = vector.shape_cast %60 : vector<1x128xf32> to vector<128xf32>
    %c21 = arith.constant 21 : index
    %c0_20 = arith.constant 0 : index
    %62 = vector.load %arg1[%c21, %c0_20] : memref<144x128xf32, #tpu.memory_space<vmem>>, vector<1x128xf32>
    %63 = vector.shape_cast %62 : vector<1x128xf32> to vector<128xf32>
    %64 = vector.shape_cast %55 : vector<128xf32> to vector<1x128xf32>
    %65 = vector.broadcast %64 : vector<1x128xf32> to vector<8x128xf32>
    %66 = arith.mulf %65, %2 : vector<8x128xf32>
    %67 = vector.shape_cast %53 : vector<128xf32> to vector<1x128xf32>
    %68 = vector.broadcast %67 : vector<1x128xf32> to vector<8x128xf32>
    %69 = arith.addf %68, %66 : vector<8x128xf32>
    %70 = vector.shape_cast %57 : vector<128xf32> to vector<1x128xf32>
    %71 = vector.broadcast %70 : vector<1x128xf32> to vector<8x128xf32>
    %72 = arith.mulf %71, %3 : vector<8x128xf32>
    %73 = arith.addf %69, %72 : vector<8x128xf32>
    %74 = vector.shape_cast %61 : vector<128xf32> to vector<1x128xf32>
    %75 = vector.broadcast %74 : vector<1x128xf32> to vector<8x128xf32>
    %76 = arith.mulf %75, %2 : vector<8x128xf32>
    %77 = vector.shape_cast %59 : vector<128xf32> to vector<1x128xf32>
    %78 = vector.broadcast %77 : vector<1x128xf32> to vector<8x128xf32>
    %79 = arith.addf %78, %76 : vector<8x128xf32>
    %80 = vector.shape_cast %63 : vector<128xf32> to vector<1x128xf32>
    %81 = vector.broadcast %80 : vector<1x128xf32> to vector<8x128xf32>
    %82 = arith.mulf %81, %3 : vector<8x128xf32>
    %83 = arith.addf %79, %82 : vector<8x128xf32>
    %84 = arith.mulf %7, %83 : vector<8x128xf32>
    %85 = arith.addf %73, %84 : vector<8x128xf32>
    %86 = arith.select %16, %85, %9 : vector<8x128xi1>, vector<8x128xf32>
    %c2 = arith.constant 2 : index
    %c0_21 = arith.constant 0 : index
    %87 = vector.load %arg1[%c2, %c0_21] : memref<144x128xf32, #tpu.memory_space<vmem>>, vector<1x128xf32>
    %88 = vector.shape_cast %87 : vector<1x128xf32> to vector<128xf32>
    %c6 = arith.constant 6 : index
    %c0_22 = arith.constant 0 : index
    %89 = vector.load %arg1[%c6, %c0_22] : memref<144x128xf32, #tpu.memory_space<vmem>>, vector<1x128xf32>
    %90 = vector.shape_cast %89 : vector<1x128xf32> to vector<128xf32>
    %c10 = arith.constant 10 : index
    %c0_23 = arith.constant 0 : index
    %91 = vector.load %arg1[%c10, %c0_23] : memref<144x128xf32, #tpu.memory_space<vmem>>, vector<1x128xf32>
    %92 = vector.shape_cast %91 : vector<1x128xf32> to vector<128xf32>
    %c14 = arith.constant 14 : index
    %c0_24 = arith.constant 0 : index
    %93 = vector.load %arg1[%c14, %c0_24] : memref<144x128xf32, #tpu.memory_space<vmem>>, vector<1x128xf32>
    %94 = vector.shape_cast %93 : vector<1x128xf32> to vector<128xf32>
    %c18 = arith.constant 18 : index
    %c0_25 = arith.constant 0 : index
    %95 = vector.load %arg1[%c18, %c0_25] : memref<144x128xf32, #tpu.memory_space<vmem>>, vector<1x128xf32>
    %96 = vector.shape_cast %95 : vector<1x128xf32> to vector<128xf32>
    %c22 = arith.constant 22 : index
    %c0_26 = arith.constant 0 : index
    %97 = vector.load %arg1[%c22, %c0_26] : memref<144x128xf32, #tpu.memory_space<vmem>>, vector<1x128xf32>
    %98 = vector.shape_cast %97 : vector<1x128xf32> to vector<128xf32>
    %99 = vector.shape_cast %90 : vector<128xf32> to vector<1x128xf32>
    %100 = vector.broadcast %99 : vector<1x128xf32> to vector<8x128xf32>
    %101 = arith.mulf %100, %2 : vector<8x128xf32>
    %102 = vector.shape_cast %88 : vector<128xf32> to vector<1x128xf32>
    %103 = vector.broadcast %102 : vector<1x128xf32> to vector<8x128xf32>
    %104 = arith.addf %103, %101 : vector<8x128xf32>
    %105 = vector.shape_cast %92 : vector<128xf32> to vector<1x128xf32>
    %106 = vector.broadcast %105 : vector<1x128xf32> to vector<8x128xf32>
    %107 = arith.mulf %106, %3 : vector<8x128xf32>
    %108 = arith.addf %104, %107 : vector<8x128xf32>
    %109 = vector.shape_cast %96 : vector<128xf32> to vector<1x128xf32>
    %110 = vector.broadcast %109 : vector<1x128xf32> to vector<8x128xf32>
    %111 = arith.mulf %110, %2 : vector<8x128xf32>
    %112 = vector.shape_cast %94 : vector<128xf32> to vector<1x128xf32>
    %113 = vector.broadcast %112 : vector<1x128xf32> to vector<8x128xf32>
    %114 = arith.addf %113, %111 : vector<8x128xf32>
    %115 = vector.shape_cast %98 : vector<128xf32> to vector<1x128xf32>
    %116 = vector.broadcast %115 : vector<1x128xf32> to vector<8x128xf32>
    %117 = arith.mulf %116, %3 : vector<8x128xf32>
    %118 = arith.addf %114, %117 : vector<8x128xf32>
    %119 = arith.mulf %7, %118 : vector<8x128xf32>
    %120 = arith.addf %108, %119 : vector<8x128xf32>
    %121 = arith.select %16, %120, %10 : vector<8x128xi1>, vector<8x128xf32>
    %c3 = arith.constant 3 : index
    %c0_27 = arith.constant 0 : index
    %122 = vector.load %arg1[%c3, %c0_27] : memref<144x128xf32, #tpu.memory_space<vmem>>, vector<1x128xf32>
    %123 = vector.shape_cast %122 : vector<1x128xf32> to vector<128xf32>
    %c7 = arith.constant 7 : index
    %c0_28 = arith.constant 0 : index
    %124 = vector.load %arg1[%c7, %c0_28] : memref<144x128xf32, #tpu.memory_space<vmem>>, vector<1x128xf32>
    %125 = vector.shape_cast %124 : vector<1x128xf32> to vector<128xf32>
    %c11 = arith.constant 11 : index
    %c0_29 = arith.constant 0 : index
    %126 = vector.load %arg1[%c11, %c0_29] : memref<144x128xf32, #tpu.memory_space<vmem>>, vector<1x128xf32>
    %127 = vector.shape_cast %126 : vector<1x128xf32> to vector<128xf32>
    %c15 = arith.constant 15 : index
    %c0_30 = arith.constant 0 : index
    %128 = vector.load %arg1[%c15, %c0_30] : memref<144x128xf32, #tpu.memory_space<vmem>>, vector<1x128xf32>
    %129 = vector.shape_cast %128 : vector<1x128xf32> to vector<128xf32>
    %c19 = arith.constant 19 : index
    %c0_31 = arith.constant 0 : index
    %130 = vector.load %arg1[%c19, %c0_31] : memref<144x128xf32, #tpu.memory_space<vmem>>, vector<1x128xf32>
    %131 = vector.shape_cast %130 : vector<1x128xf32> to vector<128xf32>
    %c23 = arith.constant 23 : index
    %c0_32 = arith.constant 0 : index
    %132 = vector.load %arg1[%c23, %c0_32] : memref<144x128xf32, #tpu.memory_space<vmem>>, vector<1x128xf32>
    %133 = vector.shape_cast %132 : vector<1x128xf32> to vector<128xf32>
    %134 = vector.shape_cast %125 : vector<128xf32> to vector<1x128xf32>
    %135 = vector.broadcast %134 : vector<1x128xf32> to vector<8x128xf32>
    %136 = arith.mulf %135, %2 : vector<8x128xf32>
    %137 = vector.shape_cast %123 : vector<128xf32> to vector<1x128xf32>
    %138 = vector.broadcast %137 : vector<1x128xf32> to vector<8x128xf32>
    %139 = arith.addf %138, %136 : vector<8x128xf32>
    %140 = vector.shape_cast %127 : vector<128xf32> to vector<1x128xf32>
    %141 = vector.broadcast %140 : vector<1x128xf32> to vector<8x128xf32>
    %142 = arith.mulf %141, %3 : vector<8x128xf32>
    %143 = arith.addf %139, %142 : vector<8x128xf32>
    %144 = vector.shape_cast %131 : vector<128xf32> to vector<1x128xf32>
    %145 = vector.broadcast %144 : vector<1x128xf32> to vector<8x128xf32>
    %146 = arith.mulf %145, %2 : vector<8x128xf32>
    %147 = vector.shape_cast %129 : vector<128xf32> to vector<1x128xf32>
    %148 = vector.broadcast %147 : vector<1x128xf32> to vector<8x128xf32>
    %149 = arith.addf %148, %146 : vector<8x128xf32>
    %150 = vector.shape_cast %133 : vector<128xf32> to vector<1x128xf32>
    %151 = vector.broadcast %150 : vector<1x128xf32> to vector<8x128xf32>
    %152 = arith.mulf %151, %3 : vector<8x128xf32>
    %153 = arith.addf %149, %152 : vector<8x128xf32>
    %154 = arith.mulf %7, %153 : vector<8x128xf32>
    %155 = arith.addf %143, %154 : vector<8x128xf32>
    %156 = arith.select %16, %155, %11 : vector<8x128xi1>, vector<8x128xf32>
    %cst_33 = arith.constant 1.000000e+00 : f32
    %157 = vector.broadcast %cst_33 : f32 to vector<8x128xf32>
    %158 = arith.cmpf oge, %2, %157 : vector<8x128xf32>
    %cst_34 = arith.constant 2.000000e+00 : f32
    %159 = vector.broadcast %cst_34 : f32 to vector<8x128xf32>
    %160 = arith.cmpf ole, %2, %159 : vector<8x128xf32>
    %161 = arith.andi %158, %160 : vector<8x128xi1>
    %c24 = arith.constant 24 : index
    %c0_35 = arith.constant 0 : index
    %162 = vector.load %arg1[%c24, %c0_35] : memref<144x128xf32, #tpu.memory_space<vmem>>, vector<1x128xf32>
    %163 = vector.shape_cast %162 : vector<1x128xf32> to vector<128xf32>
    %c28 = arith.constant 28 : index
    %c0_36 = arith.constant 0 : index
    %164 = vector.load %arg1[%c28, %c0_36] : memref<144x128xf32, #tpu.memory_space<vmem>>, vector<1x128xf32>
    %165 = vector.shape_cast %164 : vector<1x128xf32> to vector<128xf32>
    %c32 = arith.constant 32 : index
    %c0_37 = arith.constant 0 : index
    %166 = vector.load %arg1[%c32, %c0_37] : memref<144x128xf32, #tpu.memory_space<vmem>>, vector<1x128xf32>
    %167 = vector.shape_cast %166 : vector<1x128xf32> to vector<128xf32>
    %c36 = arith.constant 36 : index
    %c0_38 = arith.constant 0 : index
    %168 = vector.load %arg1[%c36, %c0_38] : memref<144x128xf32, #tpu.memory_space<vmem>>, vector<1x128xf32>
    %169 = vector.shape_cast %168 : vector<1x128xf32> to vector<128xf32>
    %c40 = arith.constant 40 : index
    %c0_39 = arith.constant 0 : index
    %170 = vector.load %arg1[%c40, %c0_39] : memref<144x128xf32, #tpu.memory_space<vmem>>, vector<1x128xf32>
    %171 = vector.shape_cast %170 : vector<1x128xf32> to vector<128xf32>
    %c44 = arith.constant 44 : index
    %c0_40 = arith.constant 0 : index
    %172 = vector.load %arg1[%c44, %c0_40] : memref<144x128xf32, #tpu.memory_space<vmem>>, vector<1x128xf32>
    %173 = vector.shape_cast %172 : vector<1x128xf32> to vector<128xf32>
    %174 = vector.shape_cast %165 : vector<128xf32> to vector<1x128xf32>
    %175 = vector.broadcast %174 : vector<1x128xf32> to vector<8x128xf32>
    %176 = arith.mulf %175, %2 : vector<8x128xf32>
    %177 = vector.shape_cast %163 : vector<128xf32> to vector<1x128xf32>
    %178 = vector.broadcast %177 : vector<1x128xf32> to vector<8x128xf32>
    %179 = arith.addf %178, %176 : vector<8x128xf32>
    %180 = vector.shape_cast %167 : vector<128xf32> to vector<1x128xf32>
    %181 = vector.broadcast %180 : vector<1x128xf32> to vector<8x128xf32>
    %182 = arith.mulf %181, %3 : vector<8x128xf32>
    %183 = arith.addf %179, %182 : vector<8x128xf32>
    %184 = vector.shape_cast %171 : vector<128xf32> to vector<1x128xf32>
    %185 = vector.broadcast %184 : vector<1x128xf32> to vector<8x128xf32>
    %186 = arith.mulf %185, %2 : vector<8x128xf32>
    %187 = vector.shape_cast %169 : vector<128xf32> to vector<1x128xf32>
    %188 = vector.broadcast %187 : vector<1x128xf32> to vector<8x128xf32>
    %189 = arith.addf %188, %186 : vector<8x128xf32>
    %190 = vector.shape_cast %173 : vector<128xf32> to vector<1x128xf32>
    %191 = vector.broadcast %190 : vector<1x128xf32> to vector<8x128xf32>
    %192 = arith.mulf %191, %3 : vector<8x128xf32>
    %193 = arith.addf %189, %192 : vector<8x128xf32>
    %194 = arith.mulf %7, %193 : vector<8x128xf32>
    %195 = arith.addf %183, %194 : vector<8x128xf32>
    %196 = arith.select %161, %195, %51 : vector<8x128xi1>, vector<8x128xf32>
    %c25 = arith.constant 25 : index
    %c0_41 = arith.constant 0 : index
    %197 = vector.load %arg1[%c25, %c0_41] : memref<144x128xf32, #tpu.memory_space<vmem>>, vector<1x128xf32>
    %198 = vector.shape_cast %197 : vector<1x128xf32> to vector<128xf32>
    %c29 = arith.constant 29 : index
    %c0_42 = arith.constant 0 : index
    %199 = vector.load %arg1[%c29, %c0_42] : memref<144x128xf32, #tpu.memory_space<vmem>>, vector<1x128xf32>
    %200 = vector.shape_cast %199 : vector<1x128xf32> to vector<128xf32>
    %c33 = arith.constant 33 : index
    %c0_43 = arith.constant 0 : index
    %201 = vector.load %arg1[%c33, %c0_43] : memref<144x128xf32, #tpu.memory_space<vmem>>, vector<1x128xf32>
    %202 = vector.shape_cast %201 : vector<1x128xf32> to vector<128xf32>
    %c37 = arith.constant 37 : index
    %c0_44 = arith.constant 0 : index
    %203 = vector.load %arg1[%c37, %c0_44] : memref<144x128xf32, #tpu.memory_space<vmem>>, vector<1x128xf32>
    %204 = vector.shape_cast %203 : vector<1x128xf32> to vector<128xf32>
    %c41 = arith.constant 41 : index
    %c0_45 = arith.constant 0 : index
    %205 = vector.load %arg1[%c41, %c0_45] : memref<144x128xf32, #tpu.memory_space<vmem>>, vector<1x128xf32>
    %206 = vector.shape_cast %205 : vector<1x128xf32> to vector<128xf32>
    %c45 = arith.constant 45 : index
    %c0_46 = arith.constant 0 : index
    %207 = vector.load %arg1[%c45, %c0_46] : memref<144x128xf32, #tpu.memory_space<vmem>>, vector<1x128xf32>
    %208 = vector.shape_cast %207 : vector<1x128xf32> to vector<128xf32>
    %209 = vector.shape_cast %200 : vector<128xf32> to vector<1x128xf32>
    %210 = vector.broadcast %209 : vector<1x128xf32> to vector<8x128xf32>
    %211 = arith.mulf %210, %2 : vector<8x128xf32>
    %212 = vector.shape_cast %198 : vector<128xf32> to vector<1x128xf32>
    %213 = vector.broadcast %212 : vector<1x128xf32> to vector<8x128xf32>
    %214 = arith.addf %213, %211 : vector<8x128xf32>
    %215 = vector.shape_cast %202 : vector<128xf32> to vector<1x128xf32>
    %216 = vector.broadcast %215 : vector<1x128xf32> to vector<8x128xf32>
    %217 = arith.mulf %216, %3 : vector<8x128xf32>
    %218 = arith.addf %214, %217 : vector<8x128xf32>
    %219 = vector.shape_cast %206 : vector<128xf32> to vector<1x128xf32>
    %220 = vector.broadcast %219 : vector<1x128xf32> to vector<8x128xf32>
    %221 = arith.mulf %220, %2 : vector<8x128xf32>
    %222 = vector.shape_cast %204 : vector<128xf32> to vector<1x128xf32>
    %223 = vector.broadcast %222 : vector<1x128xf32> to vector<8x128xf32>
    %224 = arith.addf %223, %221 : vector<8x128xf32>
    %225 = vector.shape_cast %208 : vector<128xf32> to vector<1x128xf32>
    %226 = vector.broadcast %225 : vector<1x128xf32> to vector<8x128xf32>
    %227 = arith.mulf %226, %3 : vector<8x128xf32>
    %228 = arith.addf %224, %227 : vector<8x128xf32>
    %229 = arith.mulf %7, %228 : vector<8x128xf32>
    %230 = arith.addf %218, %229 : vector<8x128xf32>
    %231 = arith.select %161, %230, %86 : vector<8x128xi1>, vector<8x128xf32>
    %c26 = arith.constant 26 : index
    %c0_47 = arith.constant 0 : index
    %232 = vector.load %arg1[%c26, %c0_47] : memref<144x128xf32, #tpu.memory_space<vmem>>, vector<1x128xf32>
    %233 = vector.shape_cast %232 : vector<1x128xf32> to vector<128xf32>
    %c30 = arith.constant 30 : index
    %c0_48 = arith.constant 0 : index
    %234 = vector.load %arg1[%c30, %c0_48] : memref<144x128xf32, #tpu.memory_space<vmem>>, vector<1x128xf32>
    %235 = vector.shape_cast %234 : vector<1x128xf32> to vector<128xf32>
    %c34 = arith.constant 34 : index
    %c0_49 = arith.constant 0 : index
    %236 = vector.load %arg1[%c34, %c0_49] : memref<144x128xf32, #tpu.memory_space<vmem>>, vector<1x128xf32>
    %237 = vector.shape_cast %236 : vector<1x128xf32> to vector<128xf32>
    %c38 = arith.constant 38 : index
    %c0_50 = arith.constant 0 : index
    %238 = vector.load %arg1[%c38, %c0_50] : memref<144x128xf32, #tpu.memory_space<vmem>>, vector<1x128xf32>
    %239 = vector.shape_cast %238 : vector<1x128xf32> to vector<128xf32>
    %c42 = arith.constant 42 : index
    %c0_51 = arith.constant 0 : index
    %240 = vector.load %arg1[%c42, %c0_51] : memref<144x128xf32, #tpu.memory_space<vmem>>, vector<1x128xf32>
    %241 = vector.shape_cast %240 : vector<1x128xf32> to vector<128xf32>
    %c46 = arith.constant 46 : index
    %c0_52 = arith.constant 0 : index
    %242 = vector.load %arg1[%c46, %c0_52] : memref<144x128xf32, #tpu.memory_space<vmem>>, vector<1x128xf32>
    %243 = vector.shape_cast %242 : vector<1x128xf32> to vector<128xf32>
    %244 = vector.shape_cast %235 : vector<128xf32> to vector<1x128xf32>
    %245 = vector.broadcast %244 : vector<1x128xf32> to vector<8x128xf32>
    %246 = arith.mulf %245, %2 : vector<8x128xf32>
    %247 = vector.shape_cast %233 : vector<128xf32> to vector<1x128xf32>
    %248 = vector.broadcast %247 : vector<1x128xf32> to vector<8x128xf32>
    %249 = arith.addf %248, %246 : vector<8x128xf32>
    %250 = vector.shape_cast %237 : vector<128xf32> to vector<1x128xf32>
    %251 = vector.broadcast %250 : vector<1x128xf32> to vector<8x128xf32>
    %252 = arith.mulf %251, %3 : vector<8x128xf32>
    %253 = arith.addf %249, %252 : vector<8x128xf32>
    %254 = vector.shape_cast %241 : vector<128xf32> to vector<1x128xf32>
    %255 = vector.broadcast %254 : vector<1x128xf32> to vector<8x128xf32>
    %256 = arith.mulf %255, %2 : vector<8x128xf32>
    %257 = vector.shape_cast %239 : vector<128xf32> to vector<1x128xf32>
    %258 = vector.broadcast %257 : vector<1x128xf32> to vector<8x128xf32>
    %259 = arith.addf %258, %256 : vector<8x128xf32>
    %260 = vector.shape_cast %243 : vector<128xf32> to vector<1x128xf32>
    %261 = vector.broadcast %260 : vector<1x128xf32> to vector<8x128xf32>
    %262 = arith.mulf %261, %3 : vector<8x128xf32>
    %263 = arith.addf %259, %262 : vector<8x128xf32>
    %264 = arith.mulf %7, %263 : vector<8x128xf32>
    %265 = arith.addf %253, %264 : vector<8x128xf32>
    %266 = arith.select %161, %265, %121 : vector<8x128xi1>, vector<8x128xf32>
    %c27 = arith.constant 27 : index
    %c0_53 = arith.constant 0 : index
    %267 = vector.load %arg1[%c27, %c0_53] : memref<144x128xf32, #tpu.memory_space<vmem>>, vector<1x128xf32>
    %268 = vector.shape_cast %267 : vector<1x128xf32> to vector<128xf32>
    %c31 = arith.constant 31 : index
    %c0_54 = arith.constant 0 : index
    %269 = vector.load %arg1[%c31, %c0_54] : memref<144x128xf32, #tpu.memory_space<vmem>>, vector<1x128xf32>
    %270 = vector.shape_cast %269 : vector<1x128xf32> to vector<128xf32>
    %c35 = arith.constant 35 : index
    %c0_55 = arith.constant 0 : index
    %271 = vector.load %arg1[%c35, %c0_55] : memref<144x128xf32, #tpu.memory_space<vmem>>, vector<1x128xf32>
    %272 = vector.shape_cast %271 : vector<1x128xf32> to vector<128xf32>
    %c39 = arith.constant 39 : index
    %c0_56 = arith.constant 0 : index
    %273 = vector.load %arg1[%c39, %c0_56] : memref<144x128xf32, #tpu.memory_space<vmem>>, vector<1x128xf32>
    %274 = vector.shape_cast %273 : vector<1x128xf32> to vector<128xf32>
    %c43 = arith.constant 43 : index
    %c0_57 = arith.constant 0 : index
    %275 = vector.load %arg1[%c43, %c0_57] : memref<144x128xf32, #tpu.memory_space<vmem>>, vector<1x128xf32>
    %276 = vector.shape_cast %275 : vector<1x128xf32> to vector<128xf32>
    %c47 = arith.constant 47 : index
    %c0_58 = arith.constant 0 : index
    %277 = vector.load %arg1[%c47, %c0_58] : memref<144x128xf32, #tpu.memory_space<vmem>>, vector<1x128xf32>
    %278 = vector.shape_cast %277 : vector<1x128xf32> to vector<128xf32>
    %279 = vector.shape_cast %270 : vector<128xf32> to vector<1x128xf32>
    %280 = vector.broadcast %279 : vector<1x128xf32> to vector<8x128xf32>
    %281 = arith.mulf %280, %2 : vector<8x128xf32>
    %282 = vector.shape_cast %268 : vector<128xf32> to vector<1x128xf32>
    %283 = vector.broadcast %282 : vector<1x128xf32> to vector<8x128xf32>
    %284 = arith.addf %283, %281 : vector<8x128xf32>
    %285 = vector.shape_cast %272 : vector<128xf32> to vector<1x128xf32>
    %286 = vector.broadcast %285 : vector<1x128xf32> to vector<8x128xf32>
    %287 = arith.mulf %286, %3 : vector<8x128xf32>
    %288 = arith.addf %284, %287 : vector<8x128xf32>
    %289 = vector.shape_cast %276 : vector<128xf32> to vector<1x128xf32>
    %290 = vector.broadcast %289 : vector<1x128xf32> to vector<8x128xf32>
    %291 = arith.mulf %290, %2 : vector<8x128xf32>
    %292 = vector.shape_cast %274 : vector<128xf32> to vector<1x128xf32>
    %293 = vector.broadcast %292 : vector<1x128xf32> to vector<8x128xf32>
    %294 = arith.addf %293, %291 : vector<8x128xf32>
    %295 = vector.shape_cast %278 : vector<128xf32> to vector<1x128xf32>
    %296 = vector.broadcast %295 : vector<1x128xf32> to vector<8x128xf32>
    %297 = arith.mulf %296, %3 : vector<8x128xf32>
    %298 = arith.addf %294, %297 : vector<8x128xf32>
    %299 = arith.mulf %7, %298 : vector<8x128xf32>
    %300 = arith.addf %288, %299 : vector<8x128xf32>
    %301 = arith.select %161, %300, %156 : vector<8x128xi1>, vector<8x128xf32>
    %cst_59 = arith.constant 2.000000e+00 : f32
    %302 = vector.broadcast %cst_59 : f32 to vector<8x128xf32>
    %303 = arith.cmpf oge, %2, %302 : vector<8x128xf32>
    %cst_60 = arith.constant 3.000000e+00 : f32
    %304 = vector.broadcast %cst_60 : f32 to vector<8x128xf32>
    %305 = arith.cmpf ole, %2, %304 : vector<8x128xf32>
    %306 = arith.andi %303, %305 : vector<8x128xi1>
    %c48 = arith.constant 48 : index
    %c0_61 = arith.constant 0 : index
    %307 = vector.load %arg1[%c48, %c0_61] : memref<144x128xf32, #tpu.memory_space<vmem>>, vector<1x128xf32>
    %308 = vector.shape_cast %307 : vector<1x128xf32> to vector<128xf32>
    %c52 = arith.constant 52 : index
    %c0_62 = arith.constant 0 : index
    %309 = vector.load %arg1[%c52, %c0_62] : memref<144x128xf32, #tpu.memory_space<vmem>>, vector<1x128xf32>
    %310 = vector.shape_cast %309 : vector<1x128xf32> to vector<128xf32>
    %c56 = arith.constant 56 : index
    %c0_63 = arith.constant 0 : index
    %311 = vector.load %arg1[%c56, %c0_63] : memref<144x128xf32, #tpu.memory_space<vmem>>, vector<1x128xf32>
    %312 = vector.shape_cast %311 : vector<1x128xf32> to vector<128xf32>
    %c60 = arith.constant 60 : index
    %c0_64 = arith.constant 0 : index
    %313 = vector.load %arg1[%c60, %c0_64] : memref<144x128xf32, #tpu.memory_space<vmem>>, vector<1x128xf32>
    %314 = vector.shape_cast %313 : vector<1x128xf32> to vector<128xf32>
    %c64 = arith.constant 64 : index
    %c0_65 = arith.constant 0 : index
    %315 = vector.load %arg1[%c64, %c0_65] : memref<144x128xf32, #tpu.memory_space<vmem>>, vector<1x128xf32>
    %316 = vector.shape_cast %315 : vector<1x128xf32> to vector<128xf32>
    %c68 = arith.constant 68 : index
    %c0_66 = arith.constant 0 : index
    %317 = vector.load %arg1[%c68, %c0_66] : memref<144x128xf32, #tpu.memory_space<vmem>>, vector<1x128xf32>
    %318 = vector.shape_cast %317 : vector<1x128xf32> to vector<128xf32>
    %319 = vector.shape_cast %310 : vector<128xf32> to vector<1x128xf32>
    %320 = vector.broadcast %319 : vector<1x128xf32> to vector<8x128xf32>
    %321 = arith.mulf %320, %2 : vector<8x128xf32>
    %322 = vector.shape_cast %308 : vector<128xf32> to vector<1x128xf32>
    %323 = vector.broadcast %322 : vector<1x128xf32> to vector<8x128xf32>
    %324 = arith.addf %323, %321 : vector<8x128xf32>
    %325 = vector.shape_cast %312 : vector<128xf32> to vector<1x128xf32>
    %326 = vector.broadcast %325 : vector<1x128xf32> to vector<8x128xf32>
    %327 = arith.mulf %326, %3 : vector<8x128xf32>
    %328 = arith.addf %324, %327 : vector<8x128xf32>
    %329 = vector.shape_cast %316 : vector<128xf32> to vector<1x128xf32>
    %330 = vector.broadcast %329 : vector<1x128xf32> to vector<8x128xf32>
    %331 = arith.mulf %330, %2 : vector<8x128xf32>
    %332 = vector.shape_cast %314 : vector<128xf32> to vector<1x128xf32>
    %333 = vector.broadcast %332 : vector<1x128xf32> to vector<8x128xf32>
    %334 = arith.addf %333, %331 : vector<8x128xf32>
    %335 = vector.shape_cast %318 : vector<128xf32> to vector<1x128xf32>
    %336 = vector.broadcast %335 : vector<1x128xf32> to vector<8x128xf32>
    %337 = arith.mulf %336, %3 : vector<8x128xf32>
    %338 = arith.addf %334, %337 : vector<8x128xf32>
    %339 = arith.mulf %7, %338 : vector<8x128xf32>
    %340 = arith.addf %328, %339 : vector<8x128xf32>
    %341 = arith.select %306, %340, %196 : vector<8x128xi1>, vector<8x128xf32>
    %c49 = arith.constant 49 : index
    %c0_67 = arith.constant 0 : index
    %342 = vector.load %arg1[%c49, %c0_67] : memref<144x128xf32, #tpu.memory_space<vmem>>, vector<1x128xf32>
    %343 = vector.shape_cast %342 : vector<1x128xf32> to vector<128xf32>
    %c53 = arith.constant 53 : index
    %c0_68 = arith.constant 0 : index
    %344 = vector.load %arg1[%c53, %c0_68] : memref<144x128xf32, #tpu.memory_space<vmem>>, vector<1x128xf32>
    %345 = vector.shape_cast %344 : vector<1x128xf32> to vector<128xf32>
    %c57 = arith.constant 57 : index
    %c0_69 = arith.constant 0 : index
    %346 = vector.load %arg1[%c57, %c0_69] : memref<144x128xf32, #tpu.memory_space<vmem>>, vector<1x128xf32>
    %347 = vector.shape_cast %346 : vector<1x128xf32> to vector<128xf32>
    %c61 = arith.constant 61 : index
    %c0_70 = arith.constant 0 : index
    %348 = vector.load %arg1[%c61, %c0_70] : memref<144x128xf32, #tpu.memory_space<vmem>>, vector<1x128xf32>
    %349 = vector.shape_cast %348 : vector<1x128xf32> to vector<128xf32>
    %c65 = arith.constant 65 : index
    %c0_71 = arith.constant 0 : index
    %350 = vector.load %arg1[%c65, %c0_71] : memref<144x128xf32, #tpu.memory_space<vmem>>, vector<1x128xf32>
    %351 = vector.shape_cast %350 : vector<1x128xf32> to vector<128xf32>
    %c69 = arith.constant 69 : index
    %c0_72 = arith.constant 0 : index
    %352 = vector.load %arg1[%c69, %c0_72] : memref<144x128xf32, #tpu.memory_space<vmem>>, vector<1x128xf32>
    %353 = vector.shape_cast %352 : vector<1x128xf32> to vector<128xf32>
    %354 = vector.shape_cast %345 : vector<128xf32> to vector<1x128xf32>
    %355 = vector.broadcast %354 : vector<1x128xf32> to vector<8x128xf32>
    %356 = arith.mulf %355, %2 : vector<8x128xf32>
    %357 = vector.shape_cast %343 : vector<128xf32> to vector<1x128xf32>
    %358 = vector.broadcast %357 : vector<1x128xf32> to vector<8x128xf32>
    %359 = arith.addf %358, %356 : vector<8x128xf32>
    %360 = vector.shape_cast %347 : vector<128xf32> to vector<1x128xf32>
    %361 = vector.broadcast %360 : vector<1x128xf32> to vector<8x128xf32>
    %362 = arith.mulf %361, %3 : vector<8x128xf32>
    %363 = arith.addf %359, %362 : vector<8x128xf32>
    %364 = vector.shape_cast %351 : vector<128xf32> to vector<1x128xf32>
    %365 = vector.broadcast %364 : vector<1x128xf32> to vector<8x128xf32>
    %366 = arith.mulf %365, %2 : vector<8x128xf32>
    %367 = vector.shape_cast %349 : vector<128xf32> to vector<1x128xf32>
    %368 = vector.broadcast %367 : vector<1x128xf32> to vector<8x128xf32>
    %369 = arith.addf %368, %366 : vector<8x128xf32>
    %370 = vector.shape_cast %353 : vector<128xf32> to vector<1x128xf32>
    %371 = vector.broadcast %370 : vector<1x128xf32> to vector<8x128xf32>
    %372 = arith.mulf %371, %3 : vector<8x128xf32>
    %373 = arith.addf %369, %372 : vector<8x128xf32>
    %374 = arith.mulf %7, %373 : vector<8x128xf32>
    %375 = arith.addf %363, %374 : vector<8x128xf32>
    %376 = arith.select %306, %375, %231 : vector<8x128xi1>, vector<8x128xf32>
    %c50 = arith.constant 50 : index
    %c0_73 = arith.constant 0 : index
    %377 = vector.load %arg1[%c50, %c0_73] : memref<144x128xf32, #tpu.memory_space<vmem>>, vector<1x128xf32>
    %378 = vector.shape_cast %377 : vector<1x128xf32> to vector<128xf32>
    %c54 = arith.constant 54 : index
    %c0_74 = arith.constant 0 : index
    %379 = vector.load %arg1[%c54, %c0_74] : memref<144x128xf32, #tpu.memory_space<vmem>>, vector<1x128xf32>
    %380 = vector.shape_cast %379 : vector<1x128xf32> to vector<128xf32>
    %c58 = arith.constant 58 : index
    %c0_75 = arith.constant 0 : index
    %381 = vector.load %arg1[%c58, %c0_75] : memref<144x128xf32, #tpu.memory_space<vmem>>, vector<1x128xf32>
    %382 = vector.shape_cast %381 : vector<1x128xf32> to vector<128xf32>
    %c62 = arith.constant 62 : index
    %c0_76 = arith.constant 0 : index
    %383 = vector.load %arg1[%c62, %c0_76] : memref<144x128xf32, #tpu.memory_space<vmem>>, vector<1x128xf32>
    %384 = vector.shape_cast %383 : vector<1x128xf32> to vector<128xf32>
    %c66 = arith.constant 66 : index
    %c0_77 = arith.constant 0 : index
    %385 = vector.load %arg1[%c66, %c0_77] : memref<144x128xf32, #tpu.memory_space<vmem>>, vector<1x128xf32>
    %386 = vector.shape_cast %385 : vector<1x128xf32> to vector<128xf32>
    %c70 = arith.constant 70 : index
    %c0_78 = arith.constant 0 : index
    %387 = vector.load %arg1[%c70, %c0_78] : memref<144x128xf32, #tpu.memory_space<vmem>>, vector<1x128xf32>
    %388 = vector.shape_cast %387 : vector<1x128xf32> to vector<128xf32>
    %389 = vector.shape_cast %380 : vector<128xf32> to vector<1x128xf32>
    %390 = vector.broadcast %389 : vector<1x128xf32> to vector<8x128xf32>
    %391 = arith.mulf %390, %2 : vector<8x128xf32>
    %392 = vector.shape_cast %378 : vector<128xf32> to vector<1x128xf32>
    %393 = vector.broadcast %392 : vector<1x128xf32> to vector<8x128xf32>
    %394 = arith.addf %393, %391 : vector<8x128xf32>
    %395 = vector.shape_cast %382 : vector<128xf32> to vector<1x128xf32>
    %396 = vector.broadcast %395 : vector<1x128xf32> to vector<8x128xf32>
    %397 = arith.mulf %396, %3 : vector<8x128xf32>
    %398 = arith.addf %394, %397 : vector<8x128xf32>
    %399 = vector.shape_cast %386 : vector<128xf32> to vector<1x128xf32>
    %400 = vector.broadcast %399 : vector<1x128xf32> to vector<8x128xf32>
    %401 = arith.mulf %400, %2 : vector<8x128xf32>
    %402 = vector.shape_cast %384 : vector<128xf32> to vector<1x128xf32>
    %403 = vector.broadcast %402 : vector<1x128xf32> to vector<8x128xf32>
    %404 = arith.addf %403, %401 : vector<8x128xf32>
    %405 = vector.shape_cast %388 : vector<128xf32> to vector<1x128xf32>
    %406 = vector.broadcast %405 : vector<1x128xf32> to vector<8x128xf32>
    %407 = arith.mulf %406, %3 : vector<8x128xf32>
    %408 = arith.addf %404, %407 : vector<8x128xf32>
    %409 = arith.mulf %7, %408 : vector<8x128xf32>
    %410 = arith.addf %398, %409 : vector<8x128xf32>
    %411 = arith.select %306, %410, %266 : vector<8x128xi1>, vector<8x128xf32>
    %c51 = arith.constant 51 : index
    %c0_79 = arith.constant 0 : index
    %412 = vector.load %arg1[%c51, %c0_79] : memref<144x128xf32, #tpu.memory_space<vmem>>, vector<1x128xf32>
    %413 = vector.shape_cast %412 : vector<1x128xf32> to vector<128xf32>
    %c55 = arith.constant 55 : index
    %c0_80 = arith.constant 0 : index
    %414 = vector.load %arg1[%c55, %c0_80] : memref<144x128xf32, #tpu.memory_space<vmem>>, vector<1x128xf32>
    %415 = vector.shape_cast %414 : vector<1x128xf32> to vector<128xf32>
    %c59 = arith.constant 59 : index
    %c0_81 = arith.constant 0 : index
    %416 = vector.load %arg1[%c59, %c0_81] : memref<144x128xf32, #tpu.memory_space<vmem>>, vector<1x128xf32>
    %417 = vector.shape_cast %416 : vector<1x128xf32> to vector<128xf32>
    %c63 = arith.constant 63 : index
    %c0_82 = arith.constant 0 : index
    %418 = vector.load %arg1[%c63, %c0_82] : memref<144x128xf32, #tpu.memory_space<vmem>>, vector<1x128xf32>
    %419 = vector.shape_cast %418 : vector<1x128xf32> to vector<128xf32>
    %c67 = arith.constant 67 : index
    %c0_83 = arith.constant 0 : index
    %420 = vector.load %arg1[%c67, %c0_83] : memref<144x128xf32, #tpu.memory_space<vmem>>, vector<1x128xf32>
    %421 = vector.shape_cast %420 : vector<1x128xf32> to vector<128xf32>
    %c71 = arith.constant 71 : index
    %c0_84 = arith.constant 0 : index
    %422 = vector.load %arg1[%c71, %c0_84] : memref<144x128xf32, #tpu.memory_space<vmem>>, vector<1x128xf32>
    %423 = vector.shape_cast %422 : vector<1x128xf32> to vector<128xf32>
    %424 = vector.shape_cast %415 : vector<128xf32> to vector<1x128xf32>
    %425 = vector.broadcast %424 : vector<1x128xf32> to vector<8x128xf32>
    %426 = arith.mulf %425, %2 : vector<8x128xf32>
    %427 = vector.shape_cast %413 : vector<128xf32> to vector<1x128xf32>
    %428 = vector.broadcast %427 : vector<1x128xf32> to vector<8x128xf32>
    %429 = arith.addf %428, %426 : vector<8x128xf32>
    %430 = vector.shape_cast %417 : vector<128xf32> to vector<1x128xf32>
    %431 = vector.broadcast %430 : vector<1x128xf32> to vector<8x128xf32>
    %432 = arith.mulf %431, %3 : vector<8x128xf32>
    %433 = arith.addf %429, %432 : vector<8x128xf32>
    %434 = vector.shape_cast %421 : vector<128xf32> to vector<1x128xf32>
    %435 = vector.broadcast %434 : vector<1x128xf32> to vector<8x128xf32>
    %436 = arith.mulf %435, %2 : vector<8x128xf32>
    %437 = vector.shape_cast %419 : vector<128xf32> to vector<1x128xf32>
    %438 = vector.broadcast %437 : vector<1x128xf32> to vector<8x128xf32>
    %439 = arith.addf %438, %436 : vector<8x128xf32>
    %440 = vector.shape_cast %423 : vector<128xf32> to vector<1x128xf32>
    %441 = vector.broadcast %440 : vector<1x128xf32> to vector<8x128xf32>
    %442 = arith.mulf %441, %3 : vector<8x128xf32>
    %443 = arith.addf %439, %442 : vector<8x128xf32>
    %444 = arith.mulf %7, %443 : vector<8x128xf32>
    %445 = arith.addf %433, %444 : vector<8x128xf32>
    %446 = arith.select %306, %445, %301 : vector<8x128xi1>, vector<8x128xf32>
    %cst_85 = arith.constant 3.000000e+00 : f32
    %447 = vector.broadcast %cst_85 : f32 to vector<8x128xf32>
    %448 = arith.cmpf oge, %2, %447 : vector<8x128xf32>
    %cst_86 = arith.constant 4.000000e+00 : f32
    %449 = vector.broadcast %cst_86 : f32 to vector<8x128xf32>
    %450 = arith.cmpf ole, %2, %449 : vector<8x128xf32>
    %451 = arith.andi %448, %450 : vector<8x128xi1>
    %c72 = arith.constant 72 : index
    %c0_87 = arith.constant 0 : index
    %452 = vector.load %arg1[%c72, %c0_87] : memref<144x128xf32, #tpu.memory_space<vmem>>, vector<1x128xf32>
    %453 = vector.shape_cast %452 : vector<1x128xf32> to vector<128xf32>
    %c76 = arith.constant 76 : index
    %c0_88 = arith.constant 0 : index
    %454 = vector.load %arg1[%c76, %c0_88] : memref<144x128xf32, #tpu.memory_space<vmem>>, vector<1x128xf32>
    %455 = vector.shape_cast %454 : vector<1x128xf32> to vector<128xf32>
    %c80 = arith.constant 80 : index
    %c0_89 = arith.constant 0 : index
    %456 = vector.load %arg1[%c80, %c0_89] : memref<144x128xf32, #tpu.memory_space<vmem>>, vector<1x128xf32>
    %457 = vector.shape_cast %456 : vector<1x128xf32> to vector<128xf32>
    %c84 = arith.constant 84 : index
    %c0_90 = arith.constant 0 : index
    %458 = vector.load %arg1[%c84, %c0_90] : memref<144x128xf32, #tpu.memory_space<vmem>>, vector<1x128xf32>
    %459 = vector.shape_cast %458 : vector<1x128xf32> to vector<128xf32>
    %c88 = arith.constant 88 : index
    %c0_91 = arith.constant 0 : index
    %460 = vector.load %arg1[%c88, %c0_91] : memref<144x128xf32, #tpu.memory_space<vmem>>, vector<1x128xf32>
    %461 = vector.shape_cast %460 : vector<1x128xf32> to vector<128xf32>
    %c92 = arith.constant 92 : index
    %c0_92 = arith.constant 0 : index
    %462 = vector.load %arg1[%c92, %c0_92] : memref<144x128xf32, #tpu.memory_space<vmem>>, vector<1x128xf32>
    %463 = vector.shape_cast %462 : vector<1x128xf32> to vector<128xf32>
    %464 = vector.shape_cast %455 : vector<128xf32> to vector<1x128xf32>
    %465 = vector.broadcast %464 : vector<1x128xf32> to vector<8x128xf32>
    %466 = arith.mulf %465, %2 : vector<8x128xf32>
    %467 = vector.shape_cast %453 : vector<128xf32> to vector<1x128xf32>
    %468 = vector.broadcast %467 : vector<1x128xf32> to vector<8x128xf32>
    %469 = arith.addf %468, %466 : vector<8x128xf32>
    %470 = vector.shape_cast %457 : vector<128xf32> to vector<1x128xf32>
    %471 = vector.broadcast %470 : vector<1x128xf32> to vector<8x128xf32>
    %472 = arith.mulf %471, %3 : vector<8x128xf32>
    %473 = arith.addf %469, %472 : vector<8x128xf32>
    %474 = vector.shape_cast %461 : vector<128xf32> to vector<1x128xf32>
    %475 = vector.broadcast %474 : vector<1x128xf32> to vector<8x128xf32>
    %476 = arith.mulf %475, %2 : vector<8x128xf32>
    %477 = vector.shape_cast %459 : vector<128xf32> to vector<1x128xf32>
    %478 = vector.broadcast %477 : vector<1x128xf32> to vector<8x128xf32>
    %479 = arith.addf %478, %476 : vector<8x128xf32>
    %480 = vector.shape_cast %463 : vector<128xf32> to vector<1x128xf32>
    %481 = vector.broadcast %480 : vector<1x128xf32> to vector<8x128xf32>
    %482 = arith.mulf %481, %3 : vector<8x128xf32>
    %483 = arith.addf %479, %482 : vector<8x128xf32>
    %484 = arith.mulf %7, %483 : vector<8x128xf32>
    %485 = arith.addf %473, %484 : vector<8x128xf32>
    %486 = arith.select %451, %485, %341 : vector<8x128xi1>, vector<8x128xf32>
    %c73 = arith.constant 73 : index
    %c0_93 = arith.constant 0 : index
    %487 = vector.load %arg1[%c73, %c0_93] : memref<144x128xf32, #tpu.memory_space<vmem>>, vector<1x128xf32>
    %488 = vector.shape_cast %487 : vector<1x128xf32> to vector<128xf32>
    %c77 = arith.constant 77 : index
    %c0_94 = arith.constant 0 : index
    %489 = vector.load %arg1[%c77, %c0_94] : memref<144x128xf32, #tpu.memory_space<vmem>>, vector<1x128xf32>
    %490 = vector.shape_cast %489 : vector<1x128xf32> to vector<128xf32>
    %c81 = arith.constant 81 : index
    %c0_95 = arith.constant 0 : index
    %491 = vector.load %arg1[%c81, %c0_95] : memref<144x128xf32, #tpu.memory_space<vmem>>, vector<1x128xf32>
    %492 = vector.shape_cast %491 : vector<1x128xf32> to vector<128xf32>
    %c85 = arith.constant 85 : index
    %c0_96 = arith.constant 0 : index
    %493 = vector.load %arg1[%c85, %c0_96] : memref<144x128xf32, #tpu.memory_space<vmem>>, vector<1x128xf32>
    %494 = vector.shape_cast %493 : vector<1x128xf32> to vector<128xf32>
    %c89 = arith.constant 89 : index
    %c0_97 = arith.constant 0 : index
    %495 = vector.load %arg1[%c89, %c0_97] : memref<144x128xf32, #tpu.memory_space<vmem>>, vector<1x128xf32>
    %496 = vector.shape_cast %495 : vector<1x128xf32> to vector<128xf32>
    %c93 = arith.constant 93 : index
    %c0_98 = arith.constant 0 : index
    %497 = vector.load %arg1[%c93, %c0_98] : memref<144x128xf32, #tpu.memory_space<vmem>>, vector<1x128xf32>
    %498 = vector.shape_cast %497 : vector<1x128xf32> to vector<128xf32>
    %499 = vector.shape_cast %490 : vector<128xf32> to vector<1x128xf32>
    %500 = vector.broadcast %499 : vector<1x128xf32> to vector<8x128xf32>
    %501 = arith.mulf %500, %2 : vector<8x128xf32>
    %502 = vector.shape_cast %488 : vector<128xf32> to vector<1x128xf32>
    %503 = vector.broadcast %502 : vector<1x128xf32> to vector<8x128xf32>
    %504 = arith.addf %503, %501 : vector<8x128xf32>
    %505 = vector.shape_cast %492 : vector<128xf32> to vector<1x128xf32>
    %506 = vector.broadcast %505 : vector<1x128xf32> to vector<8x128xf32>
    %507 = arith.mulf %506, %3 : vector<8x128xf32>
    %508 = arith.addf %504, %507 : vector<8x128xf32>
    %509 = vector.shape_cast %496 : vector<128xf32> to vector<1x128xf32>
    %510 = vector.broadcast %509 : vector<1x128xf32> to vector<8x128xf32>
    %511 = arith.mulf %510, %2 : vector<8x128xf32>
    %512 = vector.shape_cast %494 : vector<128xf32> to vector<1x128xf32>
    %513 = vector.broadcast %512 : vector<1x128xf32> to vector<8x128xf32>
    %514 = arith.addf %513, %511 : vector<8x128xf32>
    %515 = vector.shape_cast %498 : vector<128xf32> to vector<1x128xf32>
    %516 = vector.broadcast %515 : vector<1x128xf32> to vector<8x128xf32>
    %517 = arith.mulf %516, %3 : vector<8x128xf32>
    %518 = arith.addf %514, %517 : vector<8x128xf32>
    %519 = arith.mulf %7, %518 : vector<8x128xf32>
    %520 = arith.addf %508, %519 : vector<8x128xf32>
    %521 = arith.select %451, %520, %376 : vector<8x128xi1>, vector<8x128xf32>
    %c74 = arith.constant 74 : index
    %c0_99 = arith.constant 0 : index
    %522 = vector.load %arg1[%c74, %c0_99] : memref<144x128xf32, #tpu.memory_space<vmem>>, vector<1x128xf32>
    %523 = vector.shape_cast %522 : vector<1x128xf32> to vector<128xf32>
    %c78 = arith.constant 78 : index
    %c0_100 = arith.constant 0 : index
    %524 = vector.load %arg1[%c78, %c0_100] : memref<144x128xf32, #tpu.memory_space<vmem>>, vector<1x128xf32>
    %525 = vector.shape_cast %524 : vector<1x128xf32> to vector<128xf32>
    %c82 = arith.constant 82 : index
    %c0_101 = arith.constant 0 : index
    %526 = vector.load %arg1[%c82, %c0_101] : memref<144x128xf32, #tpu.memory_space<vmem>>, vector<1x128xf32>
    %527 = vector.shape_cast %526 : vector<1x128xf32> to vector<128xf32>
    %c86 = arith.constant 86 : index
    %c0_102 = arith.constant 0 : index
    %528 = vector.load %arg1[%c86, %c0_102] : memref<144x128xf32, #tpu.memory_space<vmem>>, vector<1x128xf32>
    %529 = vector.shape_cast %528 : vector<1x128xf32> to vector<128xf32>
    %c90 = arith.constant 90 : index
    %c0_103 = arith.constant 0 : index
    %530 = vector.load %arg1[%c90, %c0_103] : memref<144x128xf32, #tpu.memory_space<vmem>>, vector<1x128xf32>
    %531 = vector.shape_cast %530 : vector<1x128xf32> to vector<128xf32>
    %c94 = arith.constant 94 : index
    %c0_104 = arith.constant 0 : index
    %532 = vector.load %arg1[%c94, %c0_104] : memref<144x128xf32, #tpu.memory_space<vmem>>, vector<1x128xf32>
    %533 = vector.shape_cast %532 : vector<1x128xf32> to vector<128xf32>
    %534 = vector.shape_cast %525 : vector<128xf32> to vector<1x128xf32>
    %535 = vector.broadcast %534 : vector<1x128xf32> to vector<8x128xf32>
    %536 = arith.mulf %535, %2 : vector<8x128xf32>
    %537 = vector.shape_cast %523 : vector<128xf32> to vector<1x128xf32>
    %538 = vector.broadcast %537 : vector<1x128xf32> to vector<8x128xf32>
    %539 = arith.addf %538, %536 : vector<8x128xf32>
    %540 = vector.shape_cast %527 : vector<128xf32> to vector<1x128xf32>
    %541 = vector.broadcast %540 : vector<1x128xf32> to vector<8x128xf32>
    %542 = arith.mulf %541, %3 : vector<8x128xf32>
    %543 = arith.addf %539, %542 : vector<8x128xf32>
    %544 = vector.shape_cast %531 : vector<128xf32> to vector<1x128xf32>
    %545 = vector.broadcast %544 : vector<1x128xf32> to vector<8x128xf32>
    %546 = arith.mulf %545, %2 : vector<8x128xf32>
    %547 = vector.shape_cast %529 : vector<128xf32> to vector<1x128xf32>
    %548 = vector.broadcast %547 : vector<1x128xf32> to vector<8x128xf32>
    %549 = arith.addf %548, %546 : vector<8x128xf32>
    %550 = vector.shape_cast %533 : vector<128xf32> to vector<1x128xf32>
    %551 = vector.broadcast %550 : vector<1x128xf32> to vector<8x128xf32>
    %552 = arith.mulf %551, %3 : vector<8x128xf32>
    %553 = arith.addf %549, %552 : vector<8x128xf32>
    %554 = arith.mulf %7, %553 : vector<8x128xf32>
    %555 = arith.addf %543, %554 : vector<8x128xf32>
    %556 = arith.select %451, %555, %411 : vector<8x128xi1>, vector<8x128xf32>
    %c75 = arith.constant 75 : index
    %c0_105 = arith.constant 0 : index
    %557 = vector.load %arg1[%c75, %c0_105] : memref<144x128xf32, #tpu.memory_space<vmem>>, vector<1x128xf32>
    %558 = vector.shape_cast %557 : vector<1x128xf32> to vector<128xf32>
    %c79 = arith.constant 79 : index
    %c0_106 = arith.constant 0 : index
    %559 = vector.load %arg1[%c79, %c0_106] : memref<144x128xf32, #tpu.memory_space<vmem>>, vector<1x128xf32>
    %560 = vector.shape_cast %559 : vector<1x128xf32> to vector<128xf32>
    %c83 = arith.constant 83 : index
    %c0_107 = arith.constant 0 : index
    %561 = vector.load %arg1[%c83, %c0_107] : memref<144x128xf32, #tpu.memory_space<vmem>>, vector<1x128xf32>
    %562 = vector.shape_cast %561 : vector<1x128xf32> to vector<128xf32>
    %c87 = arith.constant 87 : index
    %c0_108 = arith.constant 0 : index
    %563 = vector.load %arg1[%c87, %c0_108] : memref<144x128xf32, #tpu.memory_space<vmem>>, vector<1x128xf32>
    %564 = vector.shape_cast %563 : vector<1x128xf32> to vector<128xf32>
    %c91 = arith.constant 91 : index
    %c0_109 = arith.constant 0 : index
    %565 = vector.load %arg1[%c91, %c0_109] : memref<144x128xf32, #tpu.memory_space<vmem>>, vector<1x128xf32>
    %566 = vector.shape_cast %565 : vector<1x128xf32> to vector<128xf32>
    %c95 = arith.constant 95 : index
    %c0_110 = arith.constant 0 : index
    %567 = vector.load %arg1[%c95, %c0_110] : memref<144x128xf32, #tpu.memory_space<vmem>>, vector<1x128xf32>
    %568 = vector.shape_cast %567 : vector<1x128xf32> to vector<128xf32>
    %569 = vector.shape_cast %560 : vector<128xf32> to vector<1x128xf32>
    %570 = vector.broadcast %569 : vector<1x128xf32> to vector<8x128xf32>
    %571 = arith.mulf %570, %2 : vector<8x128xf32>
    %572 = vector.shape_cast %558 : vector<128xf32> to vector<1x128xf32>
    %573 = vector.broadcast %572 : vector<1x128xf32> to vector<8x128xf32>
    %574 = arith.addf %573, %571 : vector<8x128xf32>
    %575 = vector.shape_cast %562 : vector<128xf32> to vector<1x128xf32>
    %576 = vector.broadcast %575 : vector<1x128xf32> to vector<8x128xf32>
    %577 = arith.mulf %576, %3 : vector<8x128xf32>
    %578 = arith.addf %574, %577 : vector<8x128xf32>
    %579 = vector.shape_cast %566 : vector<128xf32> to vector<1x128xf32>
    %580 = vector.broadcast %579 : vector<1x128xf32> to vector<8x128xf32>
    %581 = arith.mulf %580, %2 : vector<8x128xf32>
    %582 = vector.shape_cast %564 : vector<128xf32> to vector<1x128xf32>
    %583 = vector.broadcast %582 : vector<1x128xf32> to vector<8x128xf32>
    %584 = arith.addf %583, %581 : vector<8x128xf32>
    %585 = vector.shape_cast %568 : vector<128xf32> to vector<1x128xf32>
    %586 = vector.broadcast %585 : vector<1x128xf32> to vector<8x128xf32>
    %587 = arith.mulf %586, %3 : vector<8x128xf32>
    %588 = arith.addf %584, %587 : vector<8x128xf32>
    %589 = arith.mulf %7, %588 : vector<8x128xf32>
    %590 = arith.addf %578, %589 : vector<8x128xf32>
    %591 = arith.select %451, %590, %446 : vector<8x128xi1>, vector<8x128xf32>
    %cst_111 = arith.constant 4.000000e+00 : f32
    %592 = vector.broadcast %cst_111 : f32 to vector<8x128xf32>
    %593 = arith.cmpf oge, %2, %592 : vector<8x128xf32>
    %cst_112 = arith.constant 5.000000e+00 : f32
    %594 = vector.broadcast %cst_112 : f32 to vector<8x128xf32>
    %595 = arith.cmpf ole, %2, %594 : vector<8x128xf32>
    %596 = arith.andi %593, %595 : vector<8x128xi1>
    %c96 = arith.constant 96 : index
    %c0_113 = arith.constant 0 : index
    %597 = vector.load %arg1[%c96, %c0_113] : memref<144x128xf32, #tpu.memory_space<vmem>>, vector<1x128xf32>
    %598 = vector.shape_cast %597 : vector<1x128xf32> to vector<128xf32>
    %c100 = arith.constant 100 : index
    %c0_114 = arith.constant 0 : index
    %599 = vector.load %arg1[%c100, %c0_114] : memref<144x128xf32, #tpu.memory_space<vmem>>, vector<1x128xf32>
    %600 = vector.shape_cast %599 : vector<1x128xf32> to vector<128xf32>
    %c104 = arith.constant 104 : index
    %c0_115 = arith.constant 0 : index
    %601 = vector.load %arg1[%c104, %c0_115] : memref<144x128xf32, #tpu.memory_space<vmem>>, vector<1x128xf32>
    %602 = vector.shape_cast %601 : vector<1x128xf32> to vector<128xf32>
    %c108 = arith.constant 108 : index
    %c0_116 = arith.constant 0 : index
    %603 = vector.load %arg1[%c108, %c0_116] : memref<144x128xf32, #tpu.memory_space<vmem>>, vector<1x128xf32>
    %604 = vector.shape_cast %603 : vector<1x128xf32> to vector<128xf32>
    %c112 = arith.constant 112 : index
    %c0_117 = arith.constant 0 : index
    %605 = vector.load %arg1[%c112, %c0_117] : memref<144x128xf32, #tpu.memory_space<vmem>>, vector<1x128xf32>
    %606 = vector.shape_cast %605 : vector<1x128xf32> to vector<128xf32>
    %c116 = arith.constant 116 : index
    %c0_118 = arith.constant 0 : index
    %607 = vector.load %arg1[%c116, %c0_118] : memref<144x128xf32, #tpu.memory_space<vmem>>, vector<1x128xf32>
    %608 = vector.shape_cast %607 : vector<1x128xf32> to vector<128xf32>
    %609 = vector.shape_cast %600 : vector<128xf32> to vector<1x128xf32>
    %610 = vector.broadcast %609 : vector<1x128xf32> to vector<8x128xf32>
    %611 = arith.mulf %610, %2 : vector<8x128xf32>
    %612 = vector.shape_cast %598 : vector<128xf32> to vector<1x128xf32>
    %613 = vector.broadcast %612 : vector<1x128xf32> to vector<8x128xf32>
    %614 = arith.addf %613, %611 : vector<8x128xf32>
    %615 = vector.shape_cast %602 : vector<128xf32> to vector<1x128xf32>
    %616 = vector.broadcast %615 : vector<1x128xf32> to vector<8x128xf32>
    %617 = arith.mulf %616, %3 : vector<8x128xf32>
    %618 = arith.addf %614, %617 : vector<8x128xf32>
    %619 = vector.shape_cast %606 : vector<128xf32> to vector<1x128xf32>
    %620 = vector.broadcast %619 : vector<1x128xf32> to vector<8x128xf32>
    %621 = arith.mulf %620, %2 : vector<8x128xf32>
    %622 = vector.shape_cast %604 : vector<128xf32> to vector<1x128xf32>
    %623 = vector.broadcast %622 : vector<1x128xf32> to vector<8x128xf32>
    %624 = arith.addf %623, %621 : vector<8x128xf32>
    %625 = vector.shape_cast %608 : vector<128xf32> to vector<1x128xf32>
    %626 = vector.broadcast %625 : vector<1x128xf32> to vector<8x128xf32>
    %627 = arith.mulf %626, %3 : vector<8x128xf32>
    %628 = arith.addf %624, %627 : vector<8x128xf32>
    %629 = arith.mulf %7, %628 : vector<8x128xf32>
    %630 = arith.addf %618, %629 : vector<8x128xf32>
    %631 = arith.select %596, %630, %486 : vector<8x128xi1>, vector<8x128xf32>
    %c97 = arith.constant 97 : index
    %c0_119 = arith.constant 0 : index
    %632 = vector.load %arg1[%c97, %c0_119] : memref<144x128xf32, #tpu.memory_space<vmem>>, vector<1x128xf32>
    %633 = vector.shape_cast %632 : vector<1x128xf32> to vector<128xf32>
    %c101 = arith.constant 101 : index
    %c0_120 = arith.constant 0 : index
    %634 = vector.load %arg1[%c101, %c0_120] : memref<144x128xf32, #tpu.memory_space<vmem>>, vector<1x128xf32>
    %635 = vector.shape_cast %634 : vector<1x128xf32> to vector<128xf32>
    %c105 = arith.constant 105 : index
    %c0_121 = arith.constant 0 : index
    %636 = vector.load %arg1[%c105, %c0_121] : memref<144x128xf32, #tpu.memory_space<vmem>>, vector<1x128xf32>
    %637 = vector.shape_cast %636 : vector<1x128xf32> to vector<128xf32>
    %c109 = arith.constant 109 : index
    %c0_122 = arith.constant 0 : index
    %638 = vector.load %arg1[%c109, %c0_122] : memref<144x128xf32, #tpu.memory_space<vmem>>, vector<1x128xf32>
    %639 = vector.shape_cast %638 : vector<1x128xf32> to vector<128xf32>
    %c113 = arith.constant 113 : index
    %c0_123 = arith.constant 0 : index
    %640 = vector.load %arg1[%c113, %c0_123] : memref<144x128xf32, #tpu.memory_space<vmem>>, vector<1x128xf32>
    %641 = vector.shape_cast %640 : vector<1x128xf32> to vector<128xf32>
    %c117 = arith.constant 117 : index
    %c0_124 = arith.constant 0 : index
    %642 = vector.load %arg1[%c117, %c0_124] : memref<144x128xf32, #tpu.memory_space<vmem>>, vector<1x128xf32>
    %643 = vector.shape_cast %642 : vector<1x128xf32> to vector<128xf32>
    %644 = vector.shape_cast %635 : vector<128xf32> to vector<1x128xf32>
    %645 = vector.broadcast %644 : vector<1x128xf32> to vector<8x128xf32>
    %646 = arith.mulf %645, %2 : vector<8x128xf32>
    %647 = vector.shape_cast %633 : vector<128xf32> to vector<1x128xf32>
    %648 = vector.broadcast %647 : vector<1x128xf32> to vector<8x128xf32>
    %649 = arith.addf %648, %646 : vector<8x128xf32>
    %650 = vector.shape_cast %637 : vector<128xf32> to vector<1x128xf32>
    %651 = vector.broadcast %650 : vector<1x128xf32> to vector<8x128xf32>
    %652 = arith.mulf %651, %3 : vector<8x128xf32>
    %653 = arith.addf %649, %652 : vector<8x128xf32>
    %654 = vector.shape_cast %641 : vector<128xf32> to vector<1x128xf32>
    %655 = vector.broadcast %654 : vector<1x128xf32> to vector<8x128xf32>
    %656 = arith.mulf %655, %2 : vector<8x128xf32>
    %657 = vector.shape_cast %639 : vector<128xf32> to vector<1x128xf32>
    %658 = vector.broadcast %657 : vector<1x128xf32> to vector<8x128xf32>
    %659 = arith.addf %658, %656 : vector<8x128xf32>
    %660 = vector.shape_cast %643 : vector<128xf32> to vector<1x128xf32>
    %661 = vector.broadcast %660 : vector<1x128xf32> to vector<8x128xf32>
    %662 = arith.mulf %661, %3 : vector<8x128xf32>
    %663 = arith.addf %659, %662 : vector<8x128xf32>
    %664 = arith.mulf %7, %663 : vector<8x128xf32>
    %665 = arith.addf %653, %664 : vector<8x128xf32>
    %666 = arith.select %596, %665, %521 : vector<8x128xi1>, vector<8x128xf32>
    %c98 = arith.constant 98 : index
    %c0_125 = arith.constant 0 : index
    %667 = vector.load %arg1[%c98, %c0_125] : memref<144x128xf32, #tpu.memory_space<vmem>>, vector<1x128xf32>
    %668 = vector.shape_cast %667 : vector<1x128xf32> to vector<128xf32>
    %c102 = arith.constant 102 : index
    %c0_126 = arith.constant 0 : index
    %669 = vector.load %arg1[%c102, %c0_126] : memref<144x128xf32, #tpu.memory_space<vmem>>, vector<1x128xf32>
    %670 = vector.shape_cast %669 : vector<1x128xf32> to vector<128xf32>
    %c106 = arith.constant 106 : index
    %c0_127 = arith.constant 0 : index
    %671 = vector.load %arg1[%c106, %c0_127] : memref<144x128xf32, #tpu.memory_space<vmem>>, vector<1x128xf32>
    %672 = vector.shape_cast %671 : vector<1x128xf32> to vector<128xf32>
    %c110 = arith.constant 110 : index
    %c0_128 = arith.constant 0 : index
    %673 = vector.load %arg1[%c110, %c0_128] : memref<144x128xf32, #tpu.memory_space<vmem>>, vector<1x128xf32>
    %674 = vector.shape_cast %673 : vector<1x128xf32> to vector<128xf32>
    %c114 = arith.constant 114 : index
    %c0_129 = arith.constant 0 : index
    %675 = vector.load %arg1[%c114, %c0_129] : memref<144x128xf32, #tpu.memory_space<vmem>>, vector<1x128xf32>
    %676 = vector.shape_cast %675 : vector<1x128xf32> to vector<128xf32>
    %c118 = arith.constant 118 : index
    %c0_130 = arith.constant 0 : index
    %677 = vector.load %arg1[%c118, %c0_130] : memref<144x128xf32, #tpu.memory_space<vmem>>, vector<1x128xf32>
    %678 = vector.shape_cast %677 : vector<1x128xf32> to vector<128xf32>
    %679 = vector.shape_cast %670 : vector<128xf32> to vector<1x128xf32>
    %680 = vector.broadcast %679 : vector<1x128xf32> to vector<8x128xf32>
    %681 = arith.mulf %680, %2 : vector<8x128xf32>
    %682 = vector.shape_cast %668 : vector<128xf32> to vector<1x128xf32>
    %683 = vector.broadcast %682 : vector<1x128xf32> to vector<8x128xf32>
    %684 = arith.addf %683, %681 : vector<8x128xf32>
    %685 = vector.shape_cast %672 : vector<128xf32> to vector<1x128xf32>
    %686 = vector.broadcast %685 : vector<1x128xf32> to vector<8x128xf32>
    %687 = arith.mulf %686, %3 : vector<8x128xf32>
    %688 = arith.addf %684, %687 : vector<8x128xf32>
    %689 = vector.shape_cast %676 : vector<128xf32> to vector<1x128xf32>
    %690 = vector.broadcast %689 : vector<1x128xf32> to vector<8x128xf32>
    %691 = arith.mulf %690, %2 : vector<8x128xf32>
    %692 = vector.shape_cast %674 : vector<128xf32> to vector<1x128xf32>
    %693 = vector.broadcast %692 : vector<1x128xf32> to vector<8x128xf32>
    %694 = arith.addf %693, %691 : vector<8x128xf32>
    %695 = vector.shape_cast %678 : vector<128xf32> to vector<1x128xf32>
    %696 = vector.broadcast %695 : vector<1x128xf32> to vector<8x128xf32>
    %697 = arith.mulf %696, %3 : vector<8x128xf32>
    %698 = arith.addf %694, %697 : vector<8x128xf32>
    %699 = arith.mulf %7, %698 : vector<8x128xf32>
    %700 = arith.addf %688, %699 : vector<8x128xf32>
    %701 = arith.select %596, %700, %556 : vector<8x128xi1>, vector<8x128xf32>
    %c99 = arith.constant 99 : index
    %c0_131 = arith.constant 0 : index
    %702 = vector.load %arg1[%c99, %c0_131] : memref<144x128xf32, #tpu.memory_space<vmem>>, vector<1x128xf32>
    %703 = vector.shape_cast %702 : vector<1x128xf32> to vector<128xf32>
    %c103 = arith.constant 103 : index
    %c0_132 = arith.constant 0 : index
    %704 = vector.load %arg1[%c103, %c0_132] : memref<144x128xf32, #tpu.memory_space<vmem>>, vector<1x128xf32>
    %705 = vector.shape_cast %704 : vector<1x128xf32> to vector<128xf32>
    %c107 = arith.constant 107 : index
    %c0_133 = arith.constant 0 : index
    %706 = vector.load %arg1[%c107, %c0_133] : memref<144x128xf32, #tpu.memory_space<vmem>>, vector<1x128xf32>
    %707 = vector.shape_cast %706 : vector<1x128xf32> to vector<128xf32>
    %c111 = arith.constant 111 : index
    %c0_134 = arith.constant 0 : index
    %708 = vector.load %arg1[%c111, %c0_134] : memref<144x128xf32, #tpu.memory_space<vmem>>, vector<1x128xf32>
    %709 = vector.shape_cast %708 : vector<1x128xf32> to vector<128xf32>
    %c115 = arith.constant 115 : index
    %c0_135 = arith.constant 0 : index
    %710 = vector.load %arg1[%c115, %c0_135] : memref<144x128xf32, #tpu.memory_space<vmem>>, vector<1x128xf32>
    %711 = vector.shape_cast %710 : vector<1x128xf32> to vector<128xf32>
    %c119 = arith.constant 119 : index
    %c0_136 = arith.constant 0 : index
    %712 = vector.load %arg1[%c119, %c0_136] : memref<144x128xf32, #tpu.memory_space<vmem>>, vector<1x128xf32>
    %713 = vector.shape_cast %712 : vector<1x128xf32> to vector<128xf32>
    %714 = vector.shape_cast %705 : vector<128xf32> to vector<1x128xf32>
    %715 = vector.broadcast %714 : vector<1x128xf32> to vector<8x128xf32>
    %716 = arith.mulf %715, %2 : vector<8x128xf32>
    %717 = vector.shape_cast %703 : vector<128xf32> to vector<1x128xf32>
    %718 = vector.broadcast %717 : vector<1x128xf32> to vector<8x128xf32>
    %719 = arith.addf %718, %716 : vector<8x128xf32>
    %720 = vector.shape_cast %707 : vector<128xf32> to vector<1x128xf32>
    %721 = vector.broadcast %720 : vector<1x128xf32> to vector<8x128xf32>
    %722 = arith.mulf %721, %3 : vector<8x128xf32>
    %723 = arith.addf %719, %722 : vector<8x128xf32>
    %724 = vector.shape_cast %711 : vector<128xf32> to vector<1x128xf32>
    %725 = vector.broadcast %724 : vector<1x128xf32> to vector<8x128xf32>
    %726 = arith.mulf %725, %2 : vector<8x128xf32>
    %727 = vector.shape_cast %709 : vector<128xf32> to vector<1x128xf32>
    %728 = vector.broadcast %727 : vector<1x128xf32> to vector<8x128xf32>
    %729 = arith.addf %728, %726 : vector<8x128xf32>
    %730 = vector.shape_cast %713 : vector<128xf32> to vector<1x128xf32>
    %731 = vector.broadcast %730 : vector<1x128xf32> to vector<8x128xf32>
    %732 = arith.mulf %731, %3 : vector<8x128xf32>
    %733 = arith.addf %729, %732 : vector<8x128xf32>
    %734 = arith.mulf %7, %733 : vector<8x128xf32>
    %735 = arith.addf %723, %734 : vector<8x128xf32>
    %736 = arith.select %596, %735, %591 : vector<8x128xi1>, vector<8x128xf32>
    %cst_137 = arith.constant 5.000000e+00 : f32
    %737 = vector.broadcast %cst_137 : f32 to vector<8x128xf32>
    %738 = arith.cmpf oge, %2, %737 : vector<8x128xf32>
    %cst_138 = arith.constant 6.000000e+00 : f32
    %739 = vector.broadcast %cst_138 : f32 to vector<8x128xf32>
    %740 = arith.cmpf ole, %2, %739 : vector<8x128xf32>
    %741 = arith.andi %738, %740 : vector<8x128xi1>
    %c120 = arith.constant 120 : index
    %c0_139 = arith.constant 0 : index
    %742 = vector.load %arg1[%c120, %c0_139] : memref<144x128xf32, #tpu.memory_space<vmem>>, vector<1x128xf32>
    %743 = vector.shape_cast %742 : vector<1x128xf32> to vector<128xf32>
    %c124 = arith.constant 124 : index
    %c0_140 = arith.constant 0 : index
    %744 = vector.load %arg1[%c124, %c0_140] : memref<144x128xf32, #tpu.memory_space<vmem>>, vector<1x128xf32>
    %745 = vector.shape_cast %744 : vector<1x128xf32> to vector<128xf32>
    %c128 = arith.constant 128 : index
    %c0_141 = arith.constant 0 : index
    %746 = vector.load %arg1[%c128, %c0_141] : memref<144x128xf32, #tpu.memory_space<vmem>>, vector<1x128xf32>
    %747 = vector.shape_cast %746 : vector<1x128xf32> to vector<128xf32>
    %c132 = arith.constant 132 : index
    %c0_142 = arith.constant 0 : index
    %748 = vector.load %arg1[%c132, %c0_142] : memref<144x128xf32, #tpu.memory_space<vmem>>, vector<1x128xf32>
    %749 = vector.shape_cast %748 : vector<1x128xf32> to vector<128xf32>
    %c136 = arith.constant 136 : index
    %c0_143 = arith.constant 0 : index
    %750 = vector.load %arg1[%c136, %c0_143] : memref<144x128xf32, #tpu.memory_space<vmem>>, vector<1x128xf32>
    %751 = vector.shape_cast %750 : vector<1x128xf32> to vector<128xf32>
    %c140 = arith.constant 140 : index
    %c0_144 = arith.constant 0 : index
    %752 = vector.load %arg1[%c140, %c0_144] : memref<144x128xf32, #tpu.memory_space<vmem>>, vector<1x128xf32>
    %753 = vector.shape_cast %752 : vector<1x128xf32> to vector<128xf32>
    %754 = vector.shape_cast %745 : vector<128xf32> to vector<1x128xf32>
    %755 = vector.broadcast %754 : vector<1x128xf32> to vector<8x128xf32>
    %756 = arith.mulf %755, %2 : vector<8x128xf32>
    %757 = vector.shape_cast %743 : vector<128xf32> to vector<1x128xf32>
    %758 = vector.broadcast %757 : vector<1x128xf32> to vector<8x128xf32>
    %759 = arith.addf %758, %756 : vector<8x128xf32>
    %760 = vector.shape_cast %747 : vector<128xf32> to vector<1x128xf32>
    %761 = vector.broadcast %760 : vector<1x128xf32> to vector<8x128xf32>
    %762 = arith.mulf %761, %3 : vector<8x128xf32>
    %763 = arith.addf %759, %762 : vector<8x128xf32>
    %764 = vector.shape_cast %751 : vector<128xf32> to vector<1x128xf32>
    %765 = vector.broadcast %764 : vector<1x128xf32> to vector<8x128xf32>
    %766 = arith.mulf %765, %2 : vector<8x128xf32>
    %767 = vector.shape_cast %749 : vector<128xf32> to vector<1x128xf32>
    %768 = vector.broadcast %767 : vector<1x128xf32> to vector<8x128xf32>
    %769 = arith.addf %768, %766 : vector<8x128xf32>
    %770 = vector.shape_cast %753 : vector<128xf32> to vector<1x128xf32>
    %771 = vector.broadcast %770 : vector<1x128xf32> to vector<8x128xf32>
    %772 = arith.mulf %771, %3 : vector<8x128xf32>
    %773 = arith.addf %769, %772 : vector<8x128xf32>
    %774 = arith.mulf %7, %773 : vector<8x128xf32>
    %775 = arith.addf %763, %774 : vector<8x128xf32>
    %776 = arith.select %741, %775, %631 : vector<8x128xi1>, vector<8x128xf32>
    %c121 = arith.constant 121 : index
    %c0_145 = arith.constant 0 : index
    %777 = vector.load %arg1[%c121, %c0_145] : memref<144x128xf32, #tpu.memory_space<vmem>>, vector<1x128xf32>
    %778 = vector.shape_cast %777 : vector<1x128xf32> to vector<128xf32>
    %c125 = arith.constant 125 : index
    %c0_146 = arith.constant 0 : index
    %779 = vector.load %arg1[%c125, %c0_146] : memref<144x128xf32, #tpu.memory_space<vmem>>, vector<1x128xf32>
    %780 = vector.shape_cast %779 : vector<1x128xf32> to vector<128xf32>
    %c129 = arith.constant 129 : index
    %c0_147 = arith.constant 0 : index
    %781 = vector.load %arg1[%c129, %c0_147] : memref<144x128xf32, #tpu.memory_space<vmem>>, vector<1x128xf32>
    %782 = vector.shape_cast %781 : vector<1x128xf32> to vector<128xf32>
    %c133 = arith.constant 133 : index
    %c0_148 = arith.constant 0 : index
    %783 = vector.load %arg1[%c133, %c0_148] : memref<144x128xf32, #tpu.memory_space<vmem>>, vector<1x128xf32>
    %784 = vector.shape_cast %783 : vector<1x128xf32> to vector<128xf32>
    %c137 = arith.constant 137 : index
    %c0_149 = arith.constant 0 : index
    %785 = vector.load %arg1[%c137, %c0_149] : memref<144x128xf32, #tpu.memory_space<vmem>>, vector<1x128xf32>
    %786 = vector.shape_cast %785 : vector<1x128xf32> to vector<128xf32>
    %c141 = arith.constant 141 : index
    %c0_150 = arith.constant 0 : index
    %787 = vector.load %arg1[%c141, %c0_150] : memref<144x128xf32, #tpu.memory_space<vmem>>, vector<1x128xf32>
    %788 = vector.shape_cast %787 : vector<1x128xf32> to vector<128xf32>
    %789 = vector.shape_cast %780 : vector<128xf32> to vector<1x128xf32>
    %790 = vector.broadcast %789 : vector<1x128xf32> to vector<8x128xf32>
    %791 = arith.mulf %790, %2 : vector<8x128xf32>
    %792 = vector.shape_cast %778 : vector<128xf32> to vector<1x128xf32>
    %793 = vector.broadcast %792 : vector<1x128xf32> to vector<8x128xf32>
    %794 = arith.addf %793, %791 : vector<8x128xf32>
    %795 = vector.shape_cast %782 : vector<128xf32> to vector<1x128xf32>
    %796 = vector.broadcast %795 : vector<1x128xf32> to vector<8x128xf32>
    %797 = arith.mulf %796, %3 : vector<8x128xf32>
    %798 = arith.addf %794, %797 : vector<8x128xf32>
    %799 = vector.shape_cast %786 : vector<128xf32> to vector<1x128xf32>
    %800 = vector.broadcast %799 : vector<1x128xf32> to vector<8x128xf32>
    %801 = arith.mulf %800, %2 : vector<8x128xf32>
    %802 = vector.shape_cast %784 : vector<128xf32> to vector<1x128xf32>
    %803 = vector.broadcast %802 : vector<1x128xf32> to vector<8x128xf32>
    %804 = arith.addf %803, %801 : vector<8x128xf32>
    %805 = vector.shape_cast %788 : vector<128xf32> to vector<1x128xf32>
    %806 = vector.broadcast %805 : vector<1x128xf32> to vector<8x128xf32>
    %807 = arith.mulf %806, %3 : vector<8x128xf32>
    %808 = arith.addf %804, %807 : vector<8x128xf32>
    %809 = arith.mulf %7, %808 : vector<8x128xf32>
    %810 = arith.addf %798, %809 : vector<8x128xf32>
    %811 = arith.select %741, %810, %666 : vector<8x128xi1>, vector<8x128xf32>
    %c122 = arith.constant 122 : index
    %c0_151 = arith.constant 0 : index
    %812 = vector.load %arg1[%c122, %c0_151] : memref<144x128xf32, #tpu.memory_space<vmem>>, vector<1x128xf32>
    %813 = vector.shape_cast %812 : vector<1x128xf32> to vector<128xf32>
    %c126 = arith.constant 126 : index
    %c0_152 = arith.constant 0 : index
    %814 = vector.load %arg1[%c126, %c0_152] : memref<144x128xf32, #tpu.memory_space<vmem>>, vector<1x128xf32>
    %815 = vector.shape_cast %814 : vector<1x128xf32> to vector<128xf32>
    %c130 = arith.constant 130 : index
    %c0_153 = arith.constant 0 : index
    %816 = vector.load %arg1[%c130, %c0_153] : memref<144x128xf32, #tpu.memory_space<vmem>>, vector<1x128xf32>
    %817 = vector.shape_cast %816 : vector<1x128xf32> to vector<128xf32>
    %c134 = arith.constant 134 : index
    %c0_154 = arith.constant 0 : index
    %818 = vector.load %arg1[%c134, %c0_154] : memref<144x128xf32, #tpu.memory_space<vmem>>, vector<1x128xf32>
    %819 = vector.shape_cast %818 : vector<1x128xf32> to vector<128xf32>
    %c138 = arith.constant 138 : index
    %c0_155 = arith.constant 0 : index
    %820 = vector.load %arg1[%c138, %c0_155] : memref<144x128xf32, #tpu.memory_space<vmem>>, vector<1x128xf32>
    %821 = vector.shape_cast %820 : vector<1x128xf32> to vector<128xf32>
    %c142 = arith.constant 142 : index
    %c0_156 = arith.constant 0 : index
    %822 = vector.load %arg1[%c142, %c0_156] : memref<144x128xf32, #tpu.memory_space<vmem>>, vector<1x128xf32>
    %823 = vector.shape_cast %822 : vector<1x128xf32> to vector<128xf32>
    %824 = vector.shape_cast %815 : vector<128xf32> to vector<1x128xf32>
    %825 = vector.broadcast %824 : vector<1x128xf32> to vector<8x128xf32>
    %826 = arith.mulf %825, %2 : vector<8x128xf32>
    %827 = vector.shape_cast %813 : vector<128xf32> to vector<1x128xf32>
    %828 = vector.broadcast %827 : vector<1x128xf32> to vector<8x128xf32>
    %829 = arith.addf %828, %826 : vector<8x128xf32>
    %830 = vector.shape_cast %817 : vector<128xf32> to vector<1x128xf32>
    %831 = vector.broadcast %830 : vector<1x128xf32> to vector<8x128xf32>
    %832 = arith.mulf %831, %3 : vector<8x128xf32>
    %833 = arith.addf %829, %832 : vector<8x128xf32>
    %834 = vector.shape_cast %821 : vector<128xf32> to vector<1x128xf32>
    %835 = vector.broadcast %834 : vector<1x128xf32> to vector<8x128xf32>
    %836 = arith.mulf %835, %2 : vector<8x128xf32>
    %837 = vector.shape_cast %819 : vector<128xf32> to vector<1x128xf32>
    %838 = vector.broadcast %837 : vector<1x128xf32> to vector<8x128xf32>
    %839 = arith.addf %838, %836 : vector<8x128xf32>
    %840 = vector.shape_cast %823 : vector<128xf32> to vector<1x128xf32>
    %841 = vector.broadcast %840 : vector<1x128xf32> to vector<8x128xf32>
    %842 = arith.mulf %841, %3 : vector<8x128xf32>
    %843 = arith.addf %839, %842 : vector<8x128xf32>
    %844 = arith.mulf %7, %843 : vector<8x128xf32>
    %845 = arith.addf %833, %844 : vector<8x128xf32>
    %846 = arith.select %741, %845, %701 : vector<8x128xi1>, vector<8x128xf32>
    %c123 = arith.constant 123 : index
    %c0_157 = arith.constant 0 : index
    %847 = vector.load %arg1[%c123, %c0_157] : memref<144x128xf32, #tpu.memory_space<vmem>>, vector<1x128xf32>
    %848 = vector.shape_cast %847 : vector<1x128xf32> to vector<128xf32>
    %c127 = arith.constant 127 : index
    %c0_158 = arith.constant 0 : index
    %849 = vector.load %arg1[%c127, %c0_158] : memref<144x128xf32, #tpu.memory_space<vmem>>, vector<1x128xf32>
    %850 = vector.shape_cast %849 : vector<1x128xf32> to vector<128xf32>
    %c131 = arith.constant 131 : index
    %c0_159 = arith.constant 0 : index
    %851 = vector.load %arg1[%c131, %c0_159] : memref<144x128xf32, #tpu.memory_space<vmem>>, vector<1x128xf32>
    %852 = vector.shape_cast %851 : vector<1x128xf32> to vector<128xf32>
    %c135 = arith.constant 135 : index
    %c0_160 = arith.constant 0 : index
    %853 = vector.load %arg1[%c135, %c0_160] : memref<144x128xf32, #tpu.memory_space<vmem>>, vector<1x128xf32>
    %854 = vector.shape_cast %853 : vector<1x128xf32> to vector<128xf32>
    %c139 = arith.constant 139 : index
    %c0_161 = arith.constant 0 : index
    %855 = vector.load %arg1[%c139, %c0_161] : memref<144x128xf32, #tpu.memory_space<vmem>>, vector<1x128xf32>
    %856 = vector.shape_cast %855 : vector<1x128xf32> to vector<128xf32>
    %c143 = arith.constant 143 : index
    %c0_162 = arith.constant 0 : index
    %857 = vector.load %arg1[%c143, %c0_162] : memref<144x128xf32, #tpu.memory_space<vmem>>, vector<1x128xf32>
    %858 = vector.shape_cast %857 : vector<1x128xf32> to vector<128xf32>
    %859 = vector.shape_cast %850 : vector<128xf32> to vector<1x128xf32>
    %860 = vector.broadcast %859 : vector<1x128xf32> to vector<8x128xf32>
    %861 = arith.mulf %860, %2 : vector<8x128xf32>
    %862 = vector.shape_cast %848 : vector<128xf32> to vector<1x128xf32>
    %863 = vector.broadcast %862 : vector<1x128xf32> to vector<8x128xf32>
    %864 = arith.addf %863, %861 : vector<8x128xf32>
    %865 = vector.shape_cast %852 : vector<128xf32> to vector<1x128xf32>
    %866 = vector.broadcast %865 : vector<1x128xf32> to vector<8x128xf32>
    %867 = arith.mulf %866, %3 : vector<8x128xf32>
    %868 = arith.addf %864, %867 : vector<8x128xf32>
    %869 = vector.shape_cast %856 : vector<128xf32> to vector<1x128xf32>
    %870 = vector.broadcast %869 : vector<1x128xf32> to vector<8x128xf32>
    %871 = arith.mulf %870, %2 : vector<8x128xf32>
    %872 = vector.shape_cast %854 : vector<128xf32> to vector<1x128xf32>
    %873 = vector.broadcast %872 : vector<1x128xf32> to vector<8x128xf32>
    %874 = arith.addf %873, %871 : vector<8x128xf32>
    %875 = vector.shape_cast %858 : vector<128xf32> to vector<1x128xf32>
    %876 = vector.broadcast %875 : vector<1x128xf32> to vector<8x128xf32>
    %877 = arith.mulf %876, %3 : vector<8x128xf32>
    %878 = arith.addf %874, %877 : vector<8x128xf32>
    %879 = arith.mulf %7, %878 : vector<8x128xf32>
    %880 = arith.addf %868, %879 : vector<8x128xf32>
    %881 = arith.select %741, %880, %736 : vector<8x128xi1>, vector<8x128xf32>
    %c0_163 = arith.constant 0 : index
    %c0_164 = arith.constant 0 : index
    %c0_165 = arith.constant 0 : index
    %882 = vector.load %arg3[%c0_163, %c0_164, %c0_165] : memref<4x8x128xf32, #tpu.memory_space<vmem>>, vector<1x8x128xf32>
    %883 = vector.shape_cast %882 : vector<1x8x128xf32> to vector<8x128xf32>
    %884 = vector.shape_cast %776 : vector<8x128xf32> to vector<1x8x128xf32>
    tpu.vector_store %arg3[%c0_163, %c0_164, %c0_165], %884 {strides = array<i32>} : memref<4x8x128xf32, #tpu.memory_space<vmem>>, vector<1x8x128xf32>,
    %c1_166 = arith.constant 1 : index
    %c0_167 = arith.constant 0 : index
    %c0_168 = arith.constant 0 : index
    %885 = vector.load %arg3[%c1_166, %c0_167, %c0_168] : memref<4x8x128xf32, #tpu.memory_space<vmem>>, vector<1x8x128xf32>
    %886 = vector.shape_cast %885 : vector<1x8x128xf32> to vector<8x128xf32>
    %887 = vector.shape_cast %811 : vector<8x128xf32> to vector<1x8x128xf32>
    tpu.vector_store %arg3[%c1_166, %c0_167, %c0_168], %887 {strides = array<i32>} : memref<4x8x128xf32, #tpu.memory_space<vmem>>, vector<1x8x128xf32>,
    %c2_169 = arith.constant 2 : index
    %c0_170 = arith.constant 0 : index
    %c0_171 = arith.constant 0 : index
    %888 = vector.load %arg3[%c2_169, %c0_170, %c0_171] : memref<4x8x128xf32, #tpu.memory_space<vmem>>, vector<1x8x128xf32>
    %889 = vector.shape_cast %888 : vector<1x8x128xf32> to vector<8x128xf32>
    %890 = vector.shape_cast %846 : vector<8x128xf32> to vector<1x8x128xf32>
    tpu.vector_store %arg3[%c2_169, %c0_170, %c0_171], %890 {strides = array<i32>} : memref<4x8x128xf32, #tpu.memory_space<vmem>>, vector<1x8x128xf32>,
    %c3_172 = arith.constant 3 : index
    %c0_173 = arith.constant 0 : index
    %c0_174 = arith.constant 0 : index
    %891 = vector.load %arg3[%c3_172, %c0_173, %c0_174] : memref<4x8x128xf32, #tpu.memory_space<vmem>>, vector<1x8x128xf32>
    %892 = vector.shape_cast %891 : vector<1x8x128xf32> to vector<8x128xf32>
    %893 = vector.shape_cast %881 : vector<8x128xf32> to vector<1x8x128xf32>
    tpu.vector_store %arg3[%c3_172, %c0_173, %c0_174], %893 {strides = array<i32>} : memref<4x8x128xf32, #tpu.memory_space<vmem>>, vector<1x8x128xf32>,
    return
  }
  func.func @transform_0(%arg0: i32) -> (i32, i32) {
    %c0_i32 = arith.constant 0 : i32
    %c0_i32_0 = arith.constant 0 : i32
    %c0_i32_1 = arith.constant 0 : i32
    return %c0_i32, %c0_i32_0 : i32, i32
  }
  func.func @transform_1(%arg0: i32) -> (i32, i32) {
    %c0_i32 = arith.constant 0 : i32
    %c0_i32_0 = arith.constant 0 : i32
    return %arg0, %c0_i32 : i32, i32
  }
  func.func @transform_2(%arg0: i32) -> (i32, i32, i32) {
    %c0_i32 = arith.constant 0 : i32
    %c0_i32_0 = arith.constant 0 : i32
    %c0_i32_1 = arith.constant 0 : i32
    return %c0_i32, %arg0, %c0_i32_0 : i32, i32, i32
  }
}

</mosaic_0001>

<bundles_post_ra>
// kernel: yuksel_spline.1
= control target key start
LH: loop header
LB: loop body
LE: loop exit
PB: predicated region body
PF: predicated region fallthrough
CT: control target
= control target key end

     0   :  { %v1297_v14 = vmov 683565275   ;;  %v1298_v16 = vmov 2475754826   ;;  %v1299_v18 = vmov 2131351028   ;;  %s2201_s1 = inlined_call_operand.vmem [shape: f32[8,128], index: 1, kind: input, shape index: {}]   ;;  %s2202_s0 = inlined_call_operand.vmem [shape: f32[144,128], index: 0, kind: input, shape index: {}]   ;;  %s2203_s2 = inlined_call_operand.vmem [shape: f32[4,8,128], index: 2, kind: output, shape index: {}]  }
   0x1   :  { %v11_v0 = vld [vmem:[%s2201_s1] sm:$0xff]  ;;  %v1300_v20 = vmov 2102212464   ;;  %v1301_v22 = vmov 920167782  }
   0x2   :  { %v1321_v1 = vmul.f32 6.0, %v11_v0  ;;  %v1302_v29 = vmov 1326507024   ;;  %v1136_v46 = vld [vmem:[%s2202_s0 + $0x4] ss:$0 sm:$0xff] }
   0x3   :  { %v1139_v50 = vld [vmem:[%s2202_s0 + $0x10] ss:$0 sm:$0xff]  ;;  %v1137_v55 = vld [vmem:[%s2202_s0] ss:$0 sm:$0xff]  ;;  %v1142_v56 = vld [vmem:[%s2202_s0 + $0x5] ss:$0 sm:$0xff] }
   0x4   :  { %v1324_v2 = vmul.f32 1.5707964, %v1321_v1  ;;  %v1138_v57 = vld [vmem:[%s2202_s0 + $0x8] ss:$0 sm:$0xff]  ;;  %v1140_v58 = vld [vmem:[%s2202_s0 + $0xc] ss:$0 sm:$0xff]  ;;  %v132_v59 = vmul.f32 %v1136_v46, %v1321_v1  ;;  %v148_v62 = vmul.f32 %v1139_v50, %v1321_v1 }
   0x5   :  { %v1145_v60 = vld [vmem:[%s2202_s0 + $0x11] ss:$0 sm:$0xff]  ;;  %v1141_v61 = vld [vmem:[%s2202_s0 + $0x14] ss:$0 sm:$0xff]  ;;  %v1143_v63 = vld [vmem:[%s2202_s0 + $0x1] ss:$0 sm:$0xff] }
   0x6   :  { %v18_v3 = vand.u32 2139095040, %v1324_v2  ;;  %v15_v5 = vand.u32 2147483647, %v1324_v2  ;;  %v1148_v0 = vld [vmem:[%s2202_s0 + $0x6] ss:$0 sm:$0xff]  ;;  %vm17_vm6 = vcmp.lt.s32.totalorder %v1324_v2, 0  ;;  %vm107_vm12 = vweird.f32 %v1324_v2 }
   0x7   :  { %v1162_v46 = vld [vmem:[%s2202_s0 + $0x20] ss:$0 sm:$0xff]  ;;  %vm119_vm13 = vcmp.ge.f32.partialorder %v1321_v1, 0.0  ;;  %vm120_vm14 = vcmp.le.f32.partialorder %v1321_v1, 1.0  ;;  %vm286_vm15 = vcmp.ge.f32.partialorder %v1321_v1, 1.0 }
   0x8   :  { %v19_v4 = vshrl.u32 %v18_v3, 23  ;;  %v22_v8 = vand.u32 8388607, %v15_v5  ;;  %v1151_v3 = vld [vmem:[%s2202_s0 + $0x12] ss:$0 sm:$0xff] }
   0x9   :  { %vm1600_vm7 = vcmp.le.f32.partialorder %v15_v5, 0.7853982 }
   0xa   :  { %v1132_v6 = vadd.s32 4294967169, %v19_v4  ;;  %v23_v11 = vor.u32 8388608, %v22_v8  ;;  %v1378_v4 = vmul.f32 %v1321_v1, %v1321_v1  ;;  %v173_v8 = vmul.f32 %v1142_v56, %v1321_v1 }
   0xc   :  { %v25_v7 = vadd.s32 1, %v1132_v6  ;;  %v1330_v31 = vshll.u32 %v23_v11, 8 }
   0xe   :  { %vm26_vm0 = vcmp.gt.s32.totalorder %v25_v7, 0 }
   0xf   :  { %v27_v9 = vsel %vm26_vm0, %v25_v7, 0  ;;  %v1144_v7 = vld [vmem:[%s2202_s0 + $0x9] ss:$0 sm:$0xff]  ;;  %vm287_vm0 = vcmp.le.f32.partialorder %v1321_v1, 2.0 }
  0x10   :  { %v29_v10 = vand.u32 31, %v27_v9  ;;  %v28_v12 = vshrl.u32 %v27_v9, 5  ;;  %v1154_v9 = vld [vmem:[%s2202_s0 + $0x7] ss:$0 sm:$0xff] }
  0x12   :  { %v30_v13 = vsub.s32 32, %v29_v10  ;;  %v32_v15 = vshll.u32 %v1297_v14, %v29_v10  ;;  %v35_v17 = vshll.u32 %v1298_v16, %v29_v10  ;;  %v38_v19 = vshll.u32 %v1299_v18, %v29_v10 }
  0x13   :  { %v41_v21 = vshll.u32 %v1300_v20, %v29_v10  ;;  %v44_v23 = vshll.u32 %v1301_v22, %v29_v10  ;;  %vm47_vm1 = vcmp.lt.s32.totalorder %v28_v12, 1  ;;  %vm50_vm2 = vcmp.lt.s32.totalorder %v28_v12, 4  ;;  %v1157_v10 = vld [vmem:[%s2202_s0 + $0x13] ss:$0 sm:$0xff] }
  0x14   :  { %v31_v24 = vshrl.u32 %v1297_v14, %v30_v13  ;;  %v33_v25 = vshrl.u32 %v1298_v16, %v30_v13  ;;  %v36_v26 = vshrl.u32 %v1299_v18, %v30_v13  ;;  %v39_v27 = vshrl.u32 %v1300_v20, %v30_v13  ;;  %v1150_v18 = vld [vmem:[%s2202_s0 + $0xa] ss:$0 sm:$0xff] }
  0x15   :  { %v42_v28 = vshrl.u32 %v1301_v22, %v30_v13  ;;  %v45_v30 = vshrl.u32 %v1302_v29, %v30_v13  ;;  %vm48_vm3 = vcmp.lt.s32.totalorder %v28_v12, 2  ;;  %vm49_vm4 = vcmp.lt.s32.totalorder %v28_v12, 3  ;;  %v1146_v12 = vld [vmem:[%s2202_s0 + $0xd] ss:$0 sm:$0xff]  ;;  %v1147_v13 = vld [vmem:[%s2202_s0 + $0x15] ss:$0 sm:$0xff] }
  0x16   :  { %v34_v32 = vor.u32 %v33_v25, %v32_v15  ;;  %v37_v33 = vor.u32 %v36_v26, %v35_v17  ;;  %v40_v34 = vor.u32 %v39_v27, %v38_v19  ;;  %v189_v14 = vmul.f32 %v1145_v60, %v1321_v1  ;;  %v1149_v17 = vld [vmem:[%s2202_s0 + $0x2] ss:$0 sm:$0xff]  ;;  %v1153_v25 = vld [vmem:[%s2202_s0 + $0x16] ss:$0 sm:$0xff]  ;;  %v1155_v26 = vld [vmem:[%s2202_s0 + $0x3] ss:$0 sm:$0xff] }
  0x17   :  { %v43_v35 = vor.u32 %v42_v28, %v41_v21  ;;  %v46_v36 = vor.u32 %v45_v30, %v44_v23  ;;  %v137_v15 = vadd.f32 %v1137_v55, %v132_v59  ;;  %v142_v16 = vmul.f32 %v1138_v57, %v1378_v4  ;;  %v1160_v21 = vld [vmem:[%s2202_s0 + $0x1c] ss:$0 sm:$0xff]  ;;  %v1169_v60 = vld [vmem:[%s2202_s0 + $0x29] ss:$0 sm:$0xff] }
  0x18   :  { %v51_v37 = vsel %vm47_vm1, %v31_v24, %v34_v32  ;;  %v52_v38 = vsel %vm50_vm2, %v40_v34, 2102212464  ;;  %v55_v39 = vsel %vm47_vm1, %v34_v32, %v37_v33  ;;  %v59_v40 = vsel %vm47_vm1, %v37_v33, %v40_v34  ;;  %v1152_v24 = vld [vmem:[%s2202_s0 + $0xe] ss:$0 sm:$0xff] }
  0x19   :  { %v53_v41 = vsel %vm49_vm4, %v37_v33, %v52_v38  ;;  %v56_v42 = vsel %vm50_vm2, %v43_v35, 920167782  ;;  %v60_v43 = vsel %vm50_vm2, %v46_v36, 1326507024  ;;  %v214_v19 = vmul.f32 %v1148_v0, %v1321_v1  ;;  %v1156_v33 = vld [vmem:[%s2202_s0 + $0xb] ss:$0 sm:$0xff] }
  0x1a   :  { %v57_v44 = vsel %vm49_vm4, %v40_v34, %v56_v42  ;;  %v61_v45 = vsel %vm49_vm4, %v43_v35, %v60_v43  ;;  %v54_v47 = vsel %vm48_vm3, %v51_v37, %v53_v41  ;;  %v230_v20 = vmul.f32 %v1151_v3, %v1321_v1  ;;  %v1158_v34 = vld [vmem:[%s2202_s0 + $0xf] ss:$0 sm:$0xff]  ;;  %v1159_v35 = vld [vmem:[%s2202_s0 + $0x17] ss:$0 sm:$0xff]  ;;  %v1167_v3 = vld [vmem:[%s2202_s0 + $0x19] ss:$0 sm:$0xff] }
  0x1b   :  { %v58_v48 = vsel %vm48_vm3, %v55_v39, %v57_v44  ;;  %v62_v49 = vsel %vm48_vm3, %v59_v40, %v61_v45  ;;  %v70_v6 = vmul.u32 %v1330_v31, %v54_v47  ;;  %v153_v23 = vadd.f32 %v1140_v58, %v148_v62  ;;  %v1161_v39 = vld [vmem:[%s2202_s0 + $0x18] ss:$0 sm:$0xff]  ;;  %v1163_v40 = vld [vmem:[%s2202_s0 + $0x28] ss:$0 sm:$0xff]  ;;  %v1166_v47 = vld [vmem:[%s2202_s0 + $0x1d] ss:$0 sm:$0xff] }
  0x1c   :  { %v1339_v51 = vmul.u32.u64.low %v1330_v31, %v62_v49  ;;  %v1340_v52 = vmul.u32.u64.high %v1330_v31, %v62_v49, %v1339_v51  ;;  %v1343_v53 = vmul.u32.u64.low %v1330_v31, %v58_v48  ;;  %v1344_v54 = vmul.u32.u64.high %v1330_v31, %v58_v48, %v1343_v53  ;;  %v1165_v58 = vld [vmem:[%s2202_s0 + $0x2c] ss:$0 sm:$0xff] }
  0x1d   :  { %v255_v27 = vmul.f32 %v1154_v9, %v1321_v1  ;;  %v271_v28 = vmul.f32 %v1157_v10, %v1321_v1  ;;  %v158_v30 = vmul.f32 %v1141_v61, %v1378_v4  ;;  %v178_v31 = vadd.f32 %v1143_v63, %v173_v8  ;;  %v1172_v61 = vld [vmem:[%s2202_s0 + $0x1e] ss:$0 sm:$0xff]  ;;  %v1178_v8 = vld [vmem:[%s2202_s0 + $0x1f] ss:$0 sm:$0xff] }
  0x1e   :  { %vm72_vm5 = vc.u32 %v1340_v52, %v1343_v53  ;;  %v73_v11 = vadd.s32 1, %v1344_v54  ;;  %v183_v32 = vmul.f32 %v1144_v7, %v1378_v4  ;;  %v194_v36 = vadd.f32 %v1146_v12, %v189_v14  ;;  %v1175_v7 = vld [vmem:[%s2202_s0 + $0x2a] ss:$0 sm:$0xff]  ;;  %v1170_v14 = vld [vmem:[%s2202_s0 + $0x25] ss:$0 sm:$0xff] }
  0x1f   :  { %v199_v37 = vmul.f32 %v1147_v13, %v1378_v4  ;;  %v224_v38 = vmul.f32 %v1150_v18, %v1378_v4  ;;  %v299_v41 = vmul.f32 %v1160_v21, %v1321_v1  ;;  %v219_v43 = vadd.f32 %v1149_v17, %v214_v19  ;;  %v1168_v13 = vld [vmem:[%s2202_s0 + $0x21] ss:$0 sm:$0xff]  ;;  %v1171_v17 = vld [vmem:[%s2202_s0 + $0x2d] ss:$0 sm:$0xff]  ;;  %v1174_v19 = vld [vmem:[%s2202_s0 + $0x22] ss:$0 sm:$0xff] }
  0x20   :  { %v74_v22 = vsel %vm72_vm5, %v73_v11, %v1344_v54  ;;  %v235_v44 = vadd.f32 %v1152_v24, %v230_v20  ;;  %v240_v45 = vmul.f32 %v1153_v25, %v1378_v4  ;;  %v260_v48 = vadd.f32 %v1155_v26, %v255_v27  ;;  %v1164_v54 = vld [vmem:[%s2202_s0 + $0x24] ss:$0 sm:$0xff]  ;;  %v1181_v21 = vld [vmem:[%s2202_s0 + $0x2b] ss:$0 sm:$0xff]  ;;  %v1173_v24 = vld [vmem:[%s2202_s0 + $0x1a] ss:$0 sm:$0xff] }
  0x21   :  { %v75_v29 = vadd.s32 %v74_v22, %v70_v6  ;;  %v265_v49 = vmul.f32 %v1156_v33, %v1378_v4  ;;  %v276_v50 = vadd.f32 %v1158_v34, %v271_v28  ;;  %v281_v51 = vmul.f32 %v1159_v35, %v1378_v4  ;;  %v1177_v25 = vld [vmem:[%s2202_s0 + $0x2e] ss:$0 sm:$0xff]  ;;  %v1184_v28 = vld [vmem:[%s2202_s0 + $0x34] ss:$0 sm:$0xff]  ;;  %v1176_v33 = vld [vmem:[%s2202_s0 + $0x26] ss:$0 sm:$0xff] }
  0x22   :  { %v1459_v56 = vadd.f32 %v142_v16, %v137_v15  ;;  %v1461_v57 = vadd.f32 %v158_v30, %v153_v23  ;;  %v315_v59 = vmul.f32 %v1163_v40, %v1321_v1  ;;  %v1473_v62 = vadd.f32 %v183_v32, %v178_v31  ;;  %v1179_v34 = vld [vmem:[%s2202_s0 + $0x1b] ss:$0 sm:$0xff]  ;;  %v1180_v35 = vld [vmem:[%s2202_s0 + $0x23] ss:$0 sm:$0xff]  ;;  %v1187_v40 = vld [vmem:[%s2202_s0 + $0x40] ss:$0 sm:$0xff] }
  0x23   :  { %v76_v42 = vadd.s32 536870912, %v75_v29  ;;  %v304_v63 = vadd.f32 %v1161_v39, %v299_v41  ;;  %v309_v0 = vmul.f32 %v1162_v46, %v1378_v4  ;;  %v340_v6 = vmul.f32 %v1166_v47, %v1321_v1  ;;  %v1190_v41 = vld [vmem:[%s2202_s0 + $0x35] ss:$0 sm:$0xff]  ;;  %v1183_v46 = vld [vmem:[%s2202_s0 + $0x2f] ss:$0 sm:$0xff]  ;;  %vm2053_vm5 = vmand %vm119_vm13, %vm120_vm14 }
  0x24   :  { %v1487_v10 = vadd.f32 %v199_v37, %v194_v36  ;;  %v1489_v11 = vadd.f32 %v224_v38, %v219_v43  ;;  %v1491_v12 = vadd.f32 %v240_v45, %v235_v44  ;;  %v1499_v15 = vadd.f32 %v265_v49, %v260_v48  ;;  %v1182_v45 = vld [vmem:[%s2202_s0 + $0x27] ss:$0 sm:$0xff] }
  0x25   :  { %v1457_v55 = vshrl.u32 %v76_v42, 30  ;;  %v1501_v16 = vadd.f32 %v281_v51, %v276_v50  ;;  %v356_v18 = vmul.f32 %v1169_v60, %v1321_v1  ;;  %v381_v20 = vmul.f32 %v1172_v61, %v1321_v1 }
  0x26   :  { %v320_v23 = vadd.f32 %v1164_v54, %v315_v59  ;;  %v397_v26 = vmul.f32 %v1175_v7, %v1321_v1  ;;  %v422_v27 = vmul.f32 %v1178_v8, %v1321_v1  ;;  %v1527_v30 = vadd.f32 %v309_v0, %v304_v63  ;;  %v1185_v54 = vld [vmem:[%s2202_s0 + $0x30] ss:$0 sm:$0xff]  ;;  %v1193_v59 = vld [vmem:[%s2202_s0 + $0x41] ss:$0 sm:$0xff]  ;;  %v1188_v63 = vld [vmem:[%s2202_s0 + $0x3c] ss:$0 sm:$0xff] }
  0x27   :  { %v78_v9 = vshll.u32 %v1457_v55, 30  ;;  %v345_v31 = vadd.f32 %v1167_v3, %v340_v6  ;;  %v350_v32 = vmul.f32 %v1168_v13, %v1378_v4  ;;  %v366_v37 = vmul.f32 %v1171_v17, %v1378_v4  ;;  %v1189_v13 = vld [vmem:[%s2202_s0 + $0x44] ss:$0 sm:$0xff]  ;;  %v1192_v17 = vld [vmem:[%s2202_s0 + $0x39] ss:$0 sm:$0xff] }
  0x28   :  { %v391_v38 = vmul.f32 %v1174_v19, %v1378_v4  ;;  %v438_v39 = vmul.f32 %v1181_v21, %v1321_v1  ;;  %v361_v42 = vadd.f32 %v1170_v14, %v356_v18  ;;  %v386_v43 = vadd.f32 %v1173_v24, %v381_v20  ;;  %v1191_v14 = vld [vmem:[%s2202_s0 + $0x31] ss:$0 sm:$0xff] }
  0x29   :  { %v1514_v22 = vsub.s32 %v75_v29, %v78_v9  ;;  %v325_v29 = vmul.f32 %v1165_v58, %v1378_v4  ;;  %v407_v44 = vmul.f32 %v1177_v25, %v1378_v4  ;;  %v466_v47 = vmul.f32 %v1184_v28, %v1321_v1  ;;  %v1186_v58 = vld [vmem:[%s2202_s0 + $0x38] ss:$0 sm:$0xff]  ;;  %v1196_v28 = vld [vmem:[%s2202_s0 + $0x36] ss:$0 sm:$0xff] }
  0x2a   :  { %v402_v49 = vadd.f32 %v1176_v33, %v397_v26  ;;  %v427_v50 = vadd.f32 %v1179_v34, %v422_v27  ;;  %v432_v51 = vmul.f32 %v1180_v35, %v1378_v4  ;;  %v1572_v61 = vadd.f32 %v350_v32, %v345_v31  ;;  %v1194_v27 = vld [vmem:[%s2202_s0 + $0x3d] ss:$0 sm:$0xff]  ;;  %v1199_v33 = vld [vmem:[%s2202_s0 + $0x42] ss:$0 sm:$0xff] }
  0x2b   :  { %v81_v36 = vsub.s32 0, %v1514_v22  ;;  %v1570_v60 = vadd.f32 %v325_v29, %v320_v23  ;;  %v482_v0 = vmul.f32 %v1187_v40, %v1321_v1  ;;  %v507_v3 = vmul.f32 %v1190_v41, %v1321_v1 }
  0x2c   :  { %v71_v6 = vadd.s32 %v1343_v53, %v1340_v52  ;;  %v443_v8 = vadd.f32 %v1182_v45, %v438_v39  ;;  %v448_v9 = vmul.f32 %v1183_v46, %v1378_v4  ;;  %v1591_v18 = vadd.f32 %v366_v37, %v361_v42  ;;  %v1195_v53 = vld [vmem:[%s2202_s0 + $0x45] ss:$0 sm:$0xff]  ;;  %v1197_v37 = vld [vmem:[%s2202_s0 + $0x32] ss:$0 sm:$0xff]  ;;  %v1202_v39 = vld [vmem:[%s2202_s0 + $0x37] ss:$0 sm:$0xff] }
  0x2d   :  { %v1133_v48 = vmin.u32 %v81_v36, %v1514_v22  ;;  %v471_v19 = vadd.f32 %v1185_v54, %v466_v47  ;;  %v476_v52 = vmul.f32 %v1186_v58, %v1378_v4  ;;  %v523_v20 = vmul.f32 %v1193_v59, %v1321_v1  ;;  %v1205_v45 = vld [vmem:[%s2202_s0 + $0x43] ss:$0 sm:$0xff] }
  0x2e   :  { %v1604_v24 = vadd.f32 %v391_v38, %v386_v43  ;;  %v1606_v25 = vadd.f32 %v407_v44, %v402_v49  ;;  %v1608_v26 = vadd.f32 %v432_v51, %v427_v50  ;;  %v487_v29 = vadd.f32 %v1188_v63, %v482_v0  ;;  %v1198_v38 = vld [vmem:[%s2202_s0 + $0x3a] ss:$0 sm:$0xff]  ;;  %v1200_v43 = vld [vmem:[%s2202_s0 + $0x3e] ss:$0 sm:$0xff]  ;;  %v1201_v49 = vld [vmem:[%s2202_s0 + $0x46] ss:$0 sm:$0xff] }
  0x2f   :  { %v83_v7 = vclz %v1133_v48  ;;  %v492_v5 = vmul.f32 %v1189_v13, %v1378_v4  ;;  %v512_v31 = vadd.f32 %v1191_v14, %v507_v3  ;;  %v517_v32 = vmul.f32 %v1192_v17, %v1378_v4  ;;  %v1208_v51 = vld [vmem:[%s2202_s0 + $0x4c] ss:$0 sm:$0xff]  ;;  %v1204_v63 = vld [vmem:[%s2202_s0 + $0x3b] ss:$0 sm:$0xff]  ;;  %v1206_v0 = vld [vmem:[%s2202_s0 + $0x3f] ss:$0 sm:$0xff] }
  0x30   :  { %2206 = vst [vmem:[#allocation2_spill] sm:$0xff] %v1604_v24  ;;  %2207 = vst [vmem:[#allocation3_spill] sm:$0xff] %v1608_v26  ;;  %v101_v34 = vsub.s32 4, %v1457_v55  ;;  %v1622_v35 = vadd.f32 %v448_v9, %v443_v8  ;;  %v533_v36 = vmul.f32 %v1195_v53, %v1378_v4  ;;  %v1634_v41 = vadd.f32 %v476_v52, %v471_v19  ;;  %v1211_v14 = vld [vmem:[%s2202_s0 + $0x58] ss:$0 sm:$0xff] }
  0x31   :  { %v1134_v23 = vadd.s32 4294967294, %v83_v7  ;;  %v528_v42 = vadd.f32 %v1194_v27, %v523_v20  ;;  %v548_v44 = vmul.f32 %v1196_v28, %v1321_v1  ;;  %v564_v50 = vmul.f32 %v1199_v33, %v1321_v1  ;;  %v1214_v17 = vld [vmem:[%s2202_s0 + $0x4d] ss:$0 sm:$0xff]  ;;  %v1207_v53 = vld [vmem:[%s2202_s0 + $0x47] ss:$0 sm:$0xff] }
  0x32   :  { %2208 = vst [vmem:[#allocation4_spill] sm:$0xff] %v1634_v41  ;;  %v1651_v54 = vadd.f32 %v492_v5, %v487_v29  ;;  %v1653_v58 = vadd.f32 %v517_v32, %v512_v31  ;;  %v558_v59 = vmul.f32 %v1198_v38, %v1378_v4  ;;  %v589_v3 = vmul.f32 %v1202_v39, %v1321_v1  ;;  %v1210_v20 = vld [vmem:[%s2202_s0 + $0x50] ss:$0 sm:$0xff]  ;;  %v1212_v31 = vld [vmem:[%s2202_s0 + $0x54] ss:$0 sm:$0xff] }
  0x33   :  { %vm1135_vm8 = vcmp.lt.s32.totalorder %v1134_v23, 0  ;;  %v102_v9 = vsel %vm17_vm6, %v101_v34, %v1457_v55  ;;  %v605_v13 = vmul.f32 %v1205_v45, %v1321_v1  ;;  %v1676_v19 = vadd.f32 %v533_v36, %v528_v42  ;;  %v1209_v55 = vld [vmem:[%s2202_s0 + $0x48] ss:$0 sm:$0xff]  ;;  %v1217_v32 = vld [vmem:[%s2202_s0 + $0x59] ss:$0 sm:$0xff] }
  0x34   :  { %v86_v40 = vsel %vm1135_vm8, 0, %v1134_v23  ;;  %2209 = vst [vmem:[#allocation5_spill] sm:$0xff] %v1651_v54  ;;  %2210 = vst [vmem:[#allocation6_spill] sm:$0xff] %v1653_v58  ;;  %v553_v52 = vadd.f32 %v1197_v37, %v548_v44  ;;  %v633_v23 = vmul.f32 %v1208_v51, %v1321_v1  ;;  %v569_v29 = vadd.f32 %v1200_v43, %v564_v50  ;;  %v1213_v36 = vld [vmem:[%s2202_s0 + $0x5c] ss:$0 sm:$0xff] }
  0x35   :  { %v87_v46 = vsub.s32 32, %v86_v40  ;;  %v88_v47 = vshll.u32 %v1514_v22, %v86_v40  ;;  %v91_v48 = vsub.s32 4294967266, %v86_v40  ;;  %v1203_v22 = vld [vmem:[%s2202_s0 + $0x33] ss:$0 sm:$0xff]  ;;  %2211 = vst [vmem:[#allocation7_spill] sm:$0xff] %v1676_v19  ;;  %v599_v5 = vmul.f32 %v1204_v63, %v1378_v4 }
  0x36   :  { %v104_v33 = vsel %vm1600_vm7, 0, %v102_v9  ;;  %v594_v34 = vadd.f32 %v1203_v22, %v589_v3  ;;  %v649_v37 = vmul.f32 %v1211_v14, %v1321_v1  ;;  %v1215_v38 = vld [vmem:[%s2202_s0 + $0x49] ss:$0 sm:$0xff]  ;;  %v674_v39 = vmul.f32 %v1214_v17, %v1321_v1  ;;  %v1216_v45 = vld [vmem:[%s2202_s0 + $0x51] ss:$0 sm:$0xff] }
  0x37   :  { %v89_v7 = vshrl.u32 %v71_v6, %v87_v46  ;;  %v92_v8 = vadd.s32 127, %v91_v48  ;;  %v574_v6 = vmul.f32 %v1201_v49, %v1378_v4  ;;  %v610_v43 = vadd.f32 %v1206_v0, %v605_v13  ;;  %v1220_v46 = vld [vmem:[%s2202_s0 + $0x4e] ss:$0 sm:$0xff]  ;;  %v1218_v50 = vld [vmem:[%s2202_s0 + $0x55] ss:$0 sm:$0xff] }
  0x38   :  { %v615_v44 = vmul.f32 %v1207_v53, %v1378_v4  ;;  %v638_v48 = vadd.f32 %v1209_v55, %v633_v23  ;;  %v643_v49 = vmul.f32 %v1210_v20, %v1378_v4  ;;  %v1219_v51 = vld [vmem:[%s2202_s0 + $0x5d] ss:$0 sm:$0xff]  ;;  %v690_v22 = vmul.f32 %v1217_v32, %v1321_v1  ;;  %v1223_v63 = vld [vmem:[%s2202_s0 + $0x5a] ss:$0 sm:$0xff]  ;;  %v1222_v17 = vld [vmem:[%s2202_s0 + $0x52] ss:$0 sm:$0xff] }
  0x39   :  { %v90_v27 = vor.u32 %v89_v7, %v88_v47  ;;  %v93_v28 = vshll.u32 %v92_v8, 23  ;;  %v1713_v47 = vadd.f32 %v558_v59, %v553_v52  ;;  %v1726_v59 = vand.u32 3, %v104_v33  ;;  %v1226_v8 = vld [vmem:[%s2202_s0 + $0x4f] ss:$0 sm:$0xff]  ;;  %v1232_v53 = vld [vmem:[%s2202_s0 + $0x64] ss:$0 sm:$0xff] }
  0x3a   :  { %v1728_v3 = vadd.f32 %v574_v6, %v569_v29  ;;  %v659_v7 = vmul.f32 %v1213_v36, %v1378_v4  ;;  %v654_v9 = vadd.f32 %v1212_v31, %v649_v37  ;;  %v679_v13 = vadd.f32 %v1215_v38, %v674_v39  ;;  %v1229_v6 = vld [vmem:[%s2202_s0 + $0x5b] ss:$0 sm:$0xff]  ;;  %v1235_v31 = vld [vmem:[%s2202_s0 + $0x70] ss:$0 sm:$0xff]  ;;  %v1227_v36 = vld [vmem:[%s2202_s0 + $0x4b] ss:$0 sm:$0xff] }
  0x3b   :  { %v94_v40 = vor.u32 4788187, %v93_v28  ;;  %v97_v42 = vcvt.s32.f32 %v90_v27  ;;  %2212 = vst [vmem:[#allocation8_spill] sm:$0xff] %v1713_v47  ;;  %v684_v14 = vmul.f32 %v1216_v45, %v1378_v4  ;;  %v715_v52 = vmul.f32 %v1220_v46, %v1321_v1  ;;  %v1221_v27 = vld [vmem:[%s2202_s0 + $0x4a] ss:$0 sm:$0xff] }
  0x3c   :  { %2213 = vst [vmem:[#allocation9_spill] sm:$0xff] %v1728_v3  ;;  %v1745_v20 = vadd.f32 %v599_v5, %v594_v34  ;;  %v1747_v23 = vadd.f32 %v615_v44, %v610_v43  ;;  %v1224_v28 = vld [vmem:[%s2202_s0 + $0x56] ss:$0 sm:$0xff]  ;;  %v731_v29 = vmul.f32 %v1223_v63, %v1321_v1  ;;  %v1759_v32 = vadd.f32 %v643_v49, %v638_v48  ;;  %v1225_v34 = vld [vmem:[%s2202_s0 + $0x5e] ss:$0 sm:$0xff] }
  0x3d   :  { %v95_v0 = vand.u32 2147483647, %v94_v40  ;;  %v695_v5 = vadd.f32 %v1218_v50, %v690_v22  ;;  %v700_v33 = vmul.f32 %v1219_v51, %v1378_v4  ;;  %v756_v37 = vmul.f32 %v1226_v8, %v1321_v1  ;;  %v1238_v38 = vld [vmem:[%s2202_s0 + $0x65] ss:$0 sm:$0xff]  ;;  %v1231_v43 = vld [vmem:[%s2202_s0 + $0x5f] ss:$0 sm:$0xff] }
  0x3e   :  { %2214 = vst [vmem:[#allocation10_spill] sm:$0xff] %v1745_v20  ;;  %2215 = vst [vmem:[#allocation11_spill] sm:$0xff] %v1747_v23  ;;  %v725_v40 = vmul.f32 %v1222_v17, %v1378_v4  ;;  %v772_v44 = vmul.f32 %v1229_v6, %v1321_v1  ;;  %v800_v45 = vmul.f32 %v1232_v53, %v1321_v1  ;;  %v1230_v50 = vld [vmem:[%s2202_s0 + $0x57] ss:$0 sm:$0xff]  ;;  %v1233_v51 = vld [vmem:[%s2202_s0 + $0x60] ss:$0 sm:$0xff] }
  0x3f   :  { %v98_v55 = vmul.f32 %v97_v42, %v95_v0  ;;  %2216 = vst [vmem:[#allocation12_spill] sm:$0xff] %v1759_v32  ;;  %v1228_v42 = vld [vmem:[%s2202_s0 + $0x53] ss:$0 sm:$0xff]  ;;  %v1781_v46 = vadd.f32 %v659_v7, %v654_v9  ;;  %v1783_v48 = vadd.f32 %v684_v14, %v679_v13  ;;  %v720_v49 = vadd.f32 %v1221_v27, %v715_v52  ;;  %v1234_v22 = vld [vmem:[%s2202_s0 + $0x68] ss:$0 sm:$0xff] }
  0x40   :  { %v816_v63 = vmul.f32 %v1235_v31, %v1321_v1  ;;  %v736_v7 = vadd.f32 %v1224_v28, %v731_v29  ;;  %v741_v8 = vmul.f32 %v1225_v34, %v1378_v4  ;;  %v1236_v9 = vld [vmem:[%s2202_s0 + $0x6c] ss:$0 sm:$0xff]  ;;  %v1237_v13 = vld [vmem:[%s2202_s0 + $0x74] ss:$0 sm:$0xff]  ;;  %v1241_v14 = vld [vmem:[%s2202_s0 + $0x71] ss:$0 sm:$0xff]  ;;  %v841_v17 = vmul.f32 %v1238_v38, %v1321_v1 }
  0x41   :  { %v99_v39 = vxor.u32 2147483648, %v98_v55  ;;  %2217 = vst [vmem:[#allocation13_spill] sm:$0xff] %v1781_v46  ;;  %2218 = vst [vmem:[#allocation14_spill] sm:$0xff] %v1783_v48  ;;  %v761_v6 = vadd.f32 %v1227_v36, %v756_v37  ;;  %v766_v53 = vmul.f32 %v1228_v42, %v1378_v4  ;;  %v1239_v27 = vld [vmem:[%s2202_s0 + $0x61] ss:$0 sm:$0xff]  ;;  %v777_v21 = vadd.f32 %v1230_v50, %v772_v44 }
  0x42   :  { %v1240_v28 = vld [vmem:[%s2202_s0 + $0x69] ss:$0 sm:$0xff]  ;;  %v1244_v29 = vld [vmem:[%s2202_s0 + $0x66] ss:$0 sm:$0xff]  ;;  %v805_v31 = vadd.f32 %v1233_v51, %v800_v45  ;;  %v810_v34 = vmul.f32 %v1234_v22, %v1378_v4  ;;  %v1242_v36 = vld [vmem:[%s2202_s0 + $0x6d] ss:$0 sm:$0xff]  ;;  %v826_v42 = vmul.f32 %v1237_v13, %v1378_v4  ;;  %v1844_v51 = vadd.f32 %v700_v33, %v695_v5 }
  0x43   :  { %v100_v0 = vsel %vm17_vm6, %v99_v39, %v98_v55  ;;  %v782_v55 = vmul.f32 %v1231_v43, %v1378_v4  ;;  %v1243_v37 = vld [vmem:[%s2202_s0 + $0x75] ss:$0 sm:$0xff]  ;;  %v1247_v38 = vld [vmem:[%s2202_s0 + $0x72] ss:$0 sm:$0xff]  ;;  %v821_v39 = vadd.f32 %v1236_v9, %v816_v63  ;;  %v857_v43 = vmul.f32 %v1241_v14, %v1321_v1  ;;  %v1245_v44 = vld [vmem:[%s2202_s0 + $0x62] ss:$0 sm:$0xff] }
  0x44   :  { %v103_v52 = vsel %vm1600_vm7, %v1324_v2, %v100_v0  ;;  %v1250_v45 = vld [vmem:[%s2202_s0 + $0x67] ss:$0 sm:$0xff]  ;;  %v1253_v50 = vld [vmem:[%s2202_s0 + $0x73] ss:$0 sm:$0xff]  ;;  %vm113_vm9 = vcmp.eq.s32.totalorder %v1726_v59, 2  ;;  %2219 = vst [vmem:[#allocation15_spill] sm:$0xff] %v1844_v51  ;;  %v846_v22 = vadd.f32 %v1239_v27, %v841_v17  ;;  %v851_v63 = vmul.f32 %v1240_v28, %v1378_v4  ;;  %vm2073_vm6 = vmand %vm286_vm15, %vm287_vm0 }
  0x45   :  { %1293 = vcosq.f32 %v103_v52  ;;  %v1246_v0 = vld [vmem:[%s2202_s0 + $0x6a] ss:$0 sm:$0xff]  ;;  %v1248_v9 = vld [vmem:[%s2202_s0 + $0x6e] ss:$0 sm:$0xff]  ;;  %v1249_v13 = vld [vmem:[%s2202_s0 + $0x76] ss:$0 sm:$0xff]  ;;  %v882_v14 = vmul.f32 %v1244_v29, %v1321_v1  ;;  %v1858_v5 = vadd.f32 %v725_v40, %v720_v49  ;;  %v1860_v33 = vadd.f32 %v741_v8, %v736_v7 }
  0x46   :  { %1295 = vsinq.f32 %v103_v52  ;;  %vm110_vm10 = vcmp.eq.s32.totalorder %v1726_v59, 0  ;;  %v1862_v17 = vadd.f32 %v766_v53, %v761_v6  ;;  %v898_v52 = vmul.f32 %v1247_v38, %v1321_v1  ;;  %v1251_v27 = vld [vmem:[%s2202_s0 + $0x63] ss:$0 sm:$0xff]  ;;  %v1252_v28 = vld [vmem:[%s2202_s0 + $0x6b] ss:$0 sm:$0xff] }
  0x47   :  { %2220 = vst [vmem:[#allocation16_spill] sm:$0xff] %v1858_v5  ;;  %2221 = vst [vmem:[#allocation17_spill] sm:$0xff] %v1860_v33  ;;  %v1254_v29 = vld [vmem:[%s2202_s0 + $0x6f] ss:$0 sm:$0xff]  ;;  %v1256_v40 = vld [vmem:[%s2202_s0 + $0x7c] ss:$0 sm:$0xff]  ;;  %v1878_v49 = vadd.f32 %v782_v55, %v777_v21  ;;  %v1880_v7 = vadd.f32 %v810_v34, %v805_v31  ;;  %v923_v6 = vmul.f32 %v1250_v45, %v1321_v1 }
  0x48   :  { %2222 = vst [vmem:[#allocation18_spill] sm:$0xff] %v1862_v17  ;;  %vm109_vm11 = vcmp.lt.s32.totalorder %v1726_v59, 2  ;;  %v1255_v8 = vld [vmem:[%s2202_s0 + $0x77] ss:$0 sm:$0xff]  ;;  %v939_v53 = vmul.f32 %v1253_v50, %v1321_v1  ;;  %v1259_v38 = vld [vmem:[%s2202_s0 + $0x88] ss:$0 sm:$0xff]  ;;  %v1894_v55 = vadd.f32 %v826_v42, %v821_v39  ;;  %v1896_v21 = vadd.f32 %v1242_v36, %v857_v43 }
  0x49   :  { %2223 = vst [vmem:[#allocation19_spill] sm:$0xff] %v1878_v49  ;;  %2224 = vst [vmem:[#allocation20_spill] sm:$0xff] %v1880_v7  ;;  %v1262_v17 = vld [vmem:[%s2202_s0 + $0x7d] ss:$0 sm:$0xff]  ;;  %v1899_v31 = vmul.f32 %v1243_v37, %v1378_v4  ;;  %v1902_v34 = vmul.f32 %v1246_v0, %v1378_v4  ;;  %v1257_v45 = vld [vmem:[%s2202_s0 + $0x78] ss:$0 sm:$0xff]  ;;  %v1913_v36 = vadd.f32 %v851_v63, %v846_v22 }
  0x4a   :  { %2225 = vst [vmem:[#allocation21_spill] sm:$0xff] %v1894_v55  ;;  %v1258_v50 = vld [vmem:[%s2202_s0 + $0x80] ss:$0 sm:$0xff]  ;;  %v1265_v39 = vld [vmem:[%s2202_s0 + $0x89] ss:$0 sm:$0xff]  ;;  %v1915_v42 = vadd.f32 %v1245_v44, %v882_v14  ;;  %v1918_v37 = vmul.f32 %v1249_v13, %v1378_v4  ;;  %v967_v7 = vmul.f32 %v1256_v40, %v1321_v1  ;;  %v903_v63 = vadd.f32 %v1248_v9, %v898_v52 }
  0x4b   :  { %2226 = vst [vmem:[#allocation22_spill] sm:$0xff] %v1913_v36  ;;  %v1260_v43 = vld [vmem:[%s2202_s0 + $0x84] ss:$0 sm:$0xff]  ;;  %v1261_v0 = vld [vmem:[%s2202_s0 + $0x8c] ss:$0 sm:$0xff]  ;;  %v933_v13 = vmul.f32 %v1252_v28, %v1378_v4  ;;  %v983_v14 = vmul.f32 %v1259_v38, %v1321_v1  ;;  %v1008_v55 = vmul.f32 %v1262_v17, %v1321_v1  ;;  %v928_v48 = vadd.f32 %v1251_v27, %v923_v6 }
  0x4c   :  { %v1268_v22 = vld [vmem:[%s2202_s0 + $0x7e] ss:$0 sm:$0xff]  ;;  %v1271_v44 = vld [vmem:[%s2202_s0 + $0x8a] ss:$0 sm:$0xff]  ;;  %v1264_v36 = vld [vmem:[%s2202_s0 + $0x81] ss:$0 sm:$0xff]  ;;  %v944_v9 = vadd.f32 %v1254_v29, %v939_v53  ;;  %v949_v52 = vmul.f32 %v1255_v8, %v1378_v4  ;;  %v1024_v32 = vmul.f32 %v1265_v39, %v1321_v1  ;;  %v977_v27 = vmul.f32 %v1258_v50, %v1378_v4 }
  0x4d   :  { %v1274_v40 = vld [vmem:[%s2202_s0 + $0x7f] ss:$0 sm:$0xff]  ;;  %v1277_v5 = vld [vmem:[%s2202_s0 + $0x8b] ss:$0 sm:$0xff]  ;;  %v1263_v28 = vld [vmem:[%s2202_s0 + $0x79] ss:$0 sm:$0xff]  ;;  %v993_v29 = vmul.f32 %v1261_v0, %v1378_v4  ;;  %v1049_v39 = vmul.f32 %v1268_v22, %v1321_v1  ;;  %v1065_v20 = vmul.f32 %v1271_v44, %v1321_v1  ;;  %v972_v50 = vadd.f32 %v1257_v45, %v967_v7 }
  0x4e   :  { %v1266_v17 = vld [vmem:[%s2202_s0 + $0x85] ss:$0 sm:$0xff]  ;;  %v1267_v38 = vld [vmem:[%s2202_s0 + $0x8d] ss:$0 sm:$0xff]  ;;  %v1269_v8 = vld [vmem:[%s2202_s0 + $0x7a] ss:$0 sm:$0xff]  ;;  %v1018_v0 = vmul.f32 %v1264_v36, %v1378_v4  ;;  %v1090_v44 = vmul.f32 %v1274_v40, %v1321_v1  ;;  %v1106_v49 = vmul.f32 %v1277_v5, %v1321_v1  ;;  %v988_v45 = vadd.f32 %v1260_v43, %v983_v14 }
  0x4f   :  { %v1270_v6 = vld [vmem:[%s2202_s0 + $0x82] ss:$0 sm:$0xff]  ;;  %v1273_v53 = vld [vmem:[%s2202_s0 + $0x8e] ss:$0 sm:$0xff]  ;;  %v1294_v47 = vpop.eup %1293  ;;  %v1272_v58 = vld [vmem:[%s2202_s0 + $0x86] ss:$0 sm:$0xff]  ;;  %v1013_v36 = vadd.f32 %v1263_v28, %v1008_v55  ;;  %v1034_v51 = vmul.f32 %v1267_v38, %v1378_v4  ;;  %v1029_v19 = vadd.f32 %v1266_v17, %v1024_v32  ;;  %v1054_v55 = vadd.f32 %v1269_v8, %v1049_v39 }
  0x50   :  { %v1275_v41 = vld [vmem:[%s2202_s0 + $0x7b] ss:$0 sm:$0xff]  ;;  %v1276_v22 = vld [vmem:[%s2202_s0 + $0x83] ss:$0 sm:$0xff]  ;;  %v1296_v33 = vpop.eup %1295  ;;  %v114_v7 = vxor.u32 2147483648, %v1294_v47  ;;  %v1059_v40 = vmul.f32 %v1270_v6, %v1378_v4  ;;  %v1075_v5 = vmul.f32 %v1273_v53, %v1378_v4  ;;  %v1070_v14 = vadd.f32 %v1272_v58, %v1065_v20  ;;  %v2234_v6 = vld [vmem:[#allocation7_spill] sm:$0xff] }
  0x51   :  { %v1278_v46 = vld [vmem:[%s2202_s0 + $0x87] ss:$0 sm:$0xff]  ;;  %v1279_v23 = vld [vmem:[%s2202_s0 + $0x8f] ss:$0 sm:$0xff]  ;;  %v111_v3 = vxor.u32 2147483648, %v1296_v33  ;;  %v1100_v28 = vmul.f32 %v1276_v22, %v1378_v4  ;;  %v1095_v54 = vadd.f32 %v1275_v41, %v1090_v44  ;;  %vm453_vm1 = vcmp.ge.f32.partialorder %v1321_v1, 2.0 }
  0x52   :  { %v115_v43 = vsel %vm113_vm9, %v114_v7, %v1296_v33  ;;  %v1111_v26 = vadd.f32 %v1278_v46, %v1106_v49  ;;  %v1116_v24 = vmul.f32 %v1279_v23, %v1378_v4  ;;  %vm454_vm2 = vcmp.le.f32.partialorder %v1321_v1, 3.0  ;;  %v2235_v39 = vld [vmem:[#allocation9_spill] sm:$0xff] }
  0x53   :  { %v112_v38 = vsel %vm110_vm10, %v1294_v47, %v111_v3  ;;  %v2006_v33 = vadd.f32 %v1899_v31, %v1896_v21  ;;  %v2010_v58 = vadd.f32 %v1902_v34, %v1915_v42  ;;  %v2013_v41 = vadd.f32 %v1918_v37, %v903_v63  ;;  %v2239_v7 = vld [vmem:[#allocation13_spill] sm:$0xff] }
  0x54   :  { %v116_v32 = vsel %vm109_vm11, %v112_v38, %v115_v43  ;;  %vm620_vm3 = vcmp.ge.f32.partialorder %v1321_v1, 3.0  ;;  %vm621_vm4 = vcmp.le.f32.partialorder %v1321_v1, 4.0  ;;  %v2019_v47 = vadd.f32 %v933_v13, %v928_v48  ;;  %vm2113_vm11 = vmand %vm453_vm1, %vm454_vm2 }
  0x55   :  { %v117_v4 = vsel %vm107_vm12, nan, %v116_v32  ;;  %v2021_v59 = vadd.f32 %v949_v52, %v944_v9  ;;  %v2023_v3 = vadd.f32 %v977_v27, %v972_v50  ;;  %v2027_v23 = vadd.f32 %v993_v29, %v988_v45  ;;  %v2233_v29 = vld [vmem:[#allocation5_spill] sm:$0xff]  ;;  %v2244_v32 = vld [vmem:[#allocation6_spill] sm:$0xff]  ;;  %vm622_vm12 = vmand %vm620_vm3, %vm621_vm4 }
  0x56   :  { %v2025_v20 = vmul.f32 %v117_v4, %v117_v4  ;;  %v2029_v46 = vadd.f32 %v1018_v0, %v1013_v36  ;;  %v2031_v49 = vadd.f32 %v1034_v51, %v1029_v19  ;;  %v2033_v2 = vadd.f32 %v1059_v40, %v1054_v55  ;;  %v2236_v0 = vld [vmem:[#allocation11_spill] sm:$0xff] }
  0x57   :  { %v2035_v21 = vadd.f32 %v1075_v5, %v1070_v14  ;;  %v2037_v31 = vadd.f32 %v1100_v28, %v1095_v54  ;;  %v2039_v48 = vadd.f32 %v1116_v24, %v1111_v26  ;;  %vm787_vm7 = vcmp.ge.f32.partialorder %v1321_v1, 4.0  ;;  %v2240_v36 = vld [vmem:[#allocation15_spill] sm:$0xff]  ;;  %v2241_v5 = vld [vmem:[#allocation17_spill] sm:$0xff]  ;;  %v2243_v28 = vld [vmem:[#allocation4_spill] sm:$0xff] }
  0x58   :  { %v160_v34 = vmul.f32 %v1461_v57, %v2025_v20  ;;  %v201_v42 = vmul.f32 %v1487_v10, %v2025_v20  ;;  %v242_v37 = vmul.f32 %v1491_v12, %v2025_v20  ;;  %v283_v19 = vmul.f32 %v1501_v16, %v2025_v20  ;;  %v2242_v55 = vld [vmem:[#allocation19_spill] sm:$0xff]  ;;  %v2247_v54 = vld [vmem:[#allocation12_spill] sm:$0xff] }
  0x59   :  { %v327_v57 = vmul.f32 %v1570_v60, %v2025_v20  ;;  %v368_v10 = vmul.f32 %v1591_v18, %v2025_v20  ;;  %v409_v12 = vmul.f32 %v1606_v25, %v2025_v20  ;;  %v450_v16 = vmul.f32 %v1622_v35, %v2025_v20  ;;  %v2231_v18 = vld [vmem:[#allocation2_spill] sm:$0xff]  ;;  %v2232_v25 = vld [vmem:[#allocation3_spill] sm:$0xff] }
  0x5a   :  { %v161_v24 = vadd.f32 %v160_v34, %v1459_v56  ;;  %v202_v26 = vadd.f32 %v201_v42, %v1473_v62  ;;  %v243_v51 = vadd.f32 %v242_v37, %v1489_v11  ;;  %v284_v63 = vadd.f32 %v283_v19, %v1499_v15  ;;  %v2245_v34 = vld [vmem:[#allocation8_spill] sm:$0xff]  ;;  %v2246_v37 = vld [vmem:[#allocation10_spill] sm:$0xff] }
  0x5b   :  { %vm788_vm8 = vcmp.le.f32.partialorder %v1321_v1, 5.0  ;;  %v328_v56 = vadd.f32 %v327_v57, %v1527_v30  ;;  %v369_v62 = vadd.f32 %v368_v10, %v1572_v61  ;;  %v410_v11 = vadd.f32 %v409_v12, %v2231_v18  ;;  %v2248_v10 = vld [vmem:[#allocation14_spill] sm:$0xff] }
  0x5c   :  { %v451_v15 = vadd.f32 %v450_v16, %v2232_v25  ;;  %vm954_vm9 = vcmp.ge.f32.partialorder %v1321_v1, 5.0  ;;  %vm955_vm10 = vcmp.le.f32.partialorder %v1321_v1, 6.0  ;;  %v162_v35 = vsel %vm2053_vm5, %v161_v24, 0.0  ;;  %v2249_v16 = vld [vmem:[#allocation16_spill] sm:$0xff]  ;;  %vm2157_vm13 = vmand %vm787_vm7, %vm788_vm8 }
  0x5d   :  { %v203_v13 = vsel %vm2053_vm5, %v202_v26, 0.0  ;;  %v244_v9 = vsel %vm2053_vm5, %v243_v51, 0.0  ;;  %v285_v30 = vsel %vm2053_vm5, %v284_v63, 0.0  ;;  %v329_v61 = vsel %vm2073_vm6, %v328_v56, %v162_v35  ;;  %v2250_v26 = vld [vmem:[#allocation18_spill] sm:$0xff]  ;;  %v2251_v35 = vld [vmem:[#allocation21_spill] sm:$0xff]  ;;  %vm956_vm14 = vmand %vm954_vm9, %vm955_vm10 }
  0x5e   :  { %v370_v52 = vsel %vm2073_vm6, %v369_v62, %v203_v13  ;;  %v411_v17 = vsel %vm2073_vm6, %v410_v11, %v244_v9  ;;  %v452_v27 = vsel %vm2073_vm6, %v451_v15, %v285_v30  ;;  %v494_v8 = vmul.f32 %v2233_v29, %v2025_v20 }
  0x5f   :  { %v535_v53 = vmul.f32 %v2234_v6, %v2025_v20  ;;  %v576_v50 = vmul.f32 %v2235_v39, %v2025_v20  ;;  %v617_v22 = vmul.f32 %v2236_v0, %v2025_v20  ;;  %v661_v45 = vmul.f32 %v2239_v7, %v2025_v20 }
  0x60   :  { %v702_v40 = vmul.f32 %v2240_v36, %v2025_v20  ;;  %v743_v43 = vmul.f32 %v2241_v5, %v2025_v20  ;;  %v784_v14 = vmul.f32 %v2242_v55, %v2025_v20  ;;  %v495_v38 = vadd.f32 %v494_v8, %v2243_v28  ;;  %v2255_v8 = vld [vmem:[#allocation22_spill] sm:$0xff] }
  0x61   :  { %v536_v4 = vadd.f32 %v535_v53, %v2244_v32  ;;  %v577_v42 = vadd.f32 %v576_v50, %v2245_v34  ;;  %v618_v19 = vadd.f32 %v617_v22, %v2246_v37  ;;  %v662_v57 = vadd.f32 %v661_v45, %v2247_v54 }
  0x62   :  { %v703_v12 = vadd.f32 %v702_v40, %v2248_v10  ;;  %v744_v24 = vadd.f32 %v743_v43, %v2249_v16  ;;  %v785_v51 = vadd.f32 %v784_v14, %v2250_v26  ;;  %v496_v63 = vsel %vm2113_vm11, %v495_v38, %v329_v61 }
  0x63   :  { %v537_v60 = vsel %vm2113_vm11, %v536_v4, %v370_v52  ;;  %v578_v56 = vsel %vm2113_vm11, %v577_v42, %v411_v17  ;;  %v619_v62 = vsel %vm2113_vm11, %v618_v19, %v452_v27  ;;  %v663_v18 = vsel %vm622_vm12, %v662_v57, %v496_v63  ;;  %v2254_v27 = vld [vmem:[#allocation20_spill] sm:$0xff] }
  0x64   :  { %v704_v11 = vsel %vm622_vm12, %v703_v12, %v537_v60  ;;  %v745_v25 = vsel %vm622_vm12, %v744_v24, %v578_v56  ;;  %v786_v15 = vsel %vm622_vm12, %v785_v51, %v619_v62  ;;  %v828_v13 = vmul.f32 %v2251_v35, %v2025_v20 }
  0x65   :  { %v869_v9 = vmul.f32 %v2006_v33, %v2025_v20  ;;  %v910_v30 = vmul.f32 %v2013_v41, %v2025_v20  ;;  %v951_v61 = vmul.f32 %v2021_v59, %v2025_v20  ;;  %v995_v17 = vmul.f32 %v2027_v23, %v2025_v20 }
  0x66   :  { %v1036_v33 = vmul.f32 %v2031_v49, %v2025_v20  ;;  %v1077_v41 = vmul.f32 %v2035_v21, %v2025_v20  ;;  %v1118_v59 = vmul.f32 %v2039_v48, %v2025_v20  ;;  %v829_v29 = vadd.f32 %v828_v13, %v2254_v27 }
  0x67   :  { %v870_v6 = vadd.f32 %v869_v9, %v2255_v8  ;;  %v911_v53 = vadd.f32 %v910_v30, %v2010_v58  ;;  %v952_v39 = vadd.f32 %v951_v61, %v2019_v47  ;;  %v996_v23 = vadd.f32 %v995_v17, %v2023_v3 }
  0x68   :  { %v1037_v49 = vadd.f32 %v1036_v33, %v2029_v46  ;;  %v1078_v21 = vadd.f32 %v1077_v41, %v2033_v2  ;;  %v1119_v20 = vadd.f32 %v1118_v59, %v2037_v31  ;;  %v830_v48 = vsel %vm2157_vm13, %v829_v29, %v663_v18 }
  0x69   :  { %v871_v58 = vsel %vm2157_vm13, %v870_v6, %v704_v11  ;;  %v912_v47 = vsel %vm2157_vm13, %v911_v53, %v745_v25  ;;  %v953_v1 = vsel %vm2157_vm13, %v952_v39, %v786_v15  ;;  %v997_v50 = vsel %vm956_vm14, %v996_v23, %v830_v48 }
  0x6a   :  { %v1038_v3 = vsel %vm956_vm14, %v1037_v49, %v871_v58  ;;  %v1079_v0 = vsel %vm956_vm14, %v1078_v21, %v912_v47  ;;  %v1120_v46 = vsel %vm956_vm14, %v1119_v20, %v953_v1  ;;  %1121 = vst [vmem:[%s2203_s2] sm:$0xff] %v997_v50 }
  0x6b   :  { %1280 = vst [vmem:[%s2203_s2 + $0x8] sm:$0xff] %v1038_v3  ;;  %1281 = vst [vmem:[%s2203_s2 + $0x10] sm:$0xff] %v1079_v0 }
  0x6c   :  { %1282 = vst [vmem:[%s2203_s2 + $0x18] sm:$0xff] %v1120_v46 }

</bundles_post_ra>
